<compile_context>
chip_gen: v7x
topology: tpu7x:2x2x1
jax: 0.10.0
libtpu: 0.0.40
codegen_flags: <defaults>
</compile_context>

<pallas_src>
import math
import numpy as np
import jax
import jax.numpy as jnp
from jax.experimental import pallas as pl
from jax.experimental.pallas import tpu as pltpu


def spectral_mix_kernel(xr_ref, xi_ref,
                        wr_ref, wd_ref, ws_ref,
                        s1r_ref, s1i_ref,
                        s2tr_ref, s2ti_ref,
                        w1r_ref, w1d_ref, w1s_ref,
                        or_ref, oi_ref):
    """One grid step == one batch element.  Layout: (channel, KX, KY)."""
    ci = wr_ref.shape[0]
    co = wr_ref.shape[1]
    kx = wr_ref.shape[2]
    ky = wr_ref.shape[3]
    f32 = jnp.float32

    def channel_mix(n, get_r, get_i, br_ref, bd_ref, bs_ref):
        # acc[o] += x[i] * W[i, o]  (complex), accumulated channel-by-channel
        # (fully unrolled; n is small and static) so only a (Co, KX, KY)
        # accumulator is live.  3-real-multiply complex product:
        #   k1 = wr*(xr+xi);  re = k1 - (wi+wr)*xi;  im = k1 + (wi-wr)*xr
        acc_r = jnp.zeros((co, kx, ky), f32)
        acc_i = jnp.zeros((co, kx, ky), f32)
        for i in range(n):
            x_r = get_r(i)[None]                 # (1, KX, KY)
            x_i = get_i(i)[None]
            k1 = br_ref[i] * (x_r + x_i)         # (Co, KX, KY)
            acc_r = acc_r + (k1 - bs_ref[i] * x_i)
            acc_i = acc_i + (k1 + bd_ref[i] * x_r)
        return acc_r, acc_i

    # ---- A: a[o] = sum_i x[i] * W[i,o]  (per-frequency channel mix) -------
    xr = xr_ref[0]                               # (Ci, KX, KY)
    xi = xi_ref[0]
    ar, ai = channel_mix(ci, lambda i: xr[i], lambda i: xi[i],
                         wr_ref, wd_ref, ws_ref)

    def bmm(sub, lhs, rhs):                      # batched matmul -> MXU
        return jnp.einsum(sub, lhs, rhs, preferred_element_type=f32)

    # ---- B: y-mixing  b1[c,x,o] = sum_i a[c,x,i] * S1[c,i,o] --------------
    s1r = s1r_ref[...]
    s1i = s1i_ref[...]
    b1r = bmm('cxi,cio->cxo', ar, s1r) - bmm('cxi,cio->cxo', ai, s1i)
    b1i = bmm('cxi,cio->cxo', ar, s1i) + bmm('cxi,cio->cxo', ai, s1r)

    # ---- C: x-mixing  b2[c,o,y] = sum_i S2T[c,o,i] * b1[c,i,y] ------------
    s2r = s2tr_ref[...]
    s2i = s2ti_ref[...]
    b2r = bmm('coi,ciy->coy', s2r, b1r) - bmm('coi,ciy->coy', s2i, b1i)
    b2i = bmm('coi,ciy->coy', s2r, b1i) + bmm('coi,ciy->coy', s2i, b1r)

    # ---- D: d[o] = sum_i b2[i] * W1[i,o]  (channel mix again) -------------
    dr, di = channel_mix(co, lambda i: b2r[i], lambda i: b2i[i],
                         w1r_ref, w1d_ref, w1s_ref)

    # ---- E: out = a * d + a == a * (d + 1) --------------------------------
    drp1 = dr + 1.0
    or_ref[0] = ar * drp1 - ai * di
    oi_ref[0] = ar * di + ai * drp1


def spectral_mix_pallas(x_ft, weights, sm1, sm2, weights1):
    """x_ft: (B, Ci, KY, KX) complex64 -> (B, Co, KY, KX) complex64."""
    B, Ci, KY, KX = x_ft.shape
    Co = weights.shape[1]
    if weights.shape != (Ci, Co, KY, KX):
        raise ValueError(f"weights shape {weights.shape} inconsistent with "
                         f"input {(Ci, Co, KY, KX)}")
    if weights1.shape != (Co, Co, KY, KX):
        raise ValueError("SpectralInt2d's second channel mix requires "
                         "in_channels == out_channels; got weights1 shape "
                         f"{weights1.shape}")
    if sm1.shape != (Co, KY, KY) or sm2.shape != (Co, KX, KX):
        raise ValueError("spatial mixing weight shapes do not match modes")

    def ri(z):
        return (jnp.real(z).astype(jnp.float32),
                jnp.imag(z).astype(jnp.float32))

    # Put KY (the longer frequency axis) last -> lane-dense elementwise work
    # and output stores; also makes both spatial mixings canonical batched
    # matmuls with no in-kernel transposes.
    xr, xi = ri(jnp.swapaxes(x_ft, -1, -2))          # (B, Ci, KX, KY)
    wr, wi = ri(jnp.swapaxes(weights, -1, -2))       # (Ci, Co, KX, KY)
    w1r, w1i = ri(jnp.swapaxes(weights1, -1, -2))    # (Co, Co, KX, KY)
    # Companions for the 3-multiply complex product (constants).
    wd, ws = wi - wr, wi + wr
    w1d, w1s = w1i - w1r, w1i + w1r
    s1r, s1i = ri(sm1)                               # (Co, KY_i, KY_o)
    s2tr, s2ti = ri(jnp.swapaxes(sm2, -1, -2))       # (Co, KX_o, KX_i)

    def batched(shape):
        n = len(shape)
        return pl.BlockSpec((1,) + shape, lambda b, _n=n: (b,) + (0,) * _n)

    def full(shape):
        n = len(shape)
        return pl.BlockSpec(shape, lambda b, _n=n: (0,) * _n)

    outr, outi = pl.pallas_call(
        spectral_mix_kernel,
        out_shape=(jax.ShapeDtypeStruct((B, Co, KX, KY), jnp.float32),
                   jax.ShapeDtypeStruct((B, Co, KX, KY), jnp.float32)),
        grid=(B,),
        in_specs=[batched((Ci, KX, KY)), batched((Ci, KX, KY)),
                  full((Ci, Co, KX, KY)), full((Ci, Co, KX, KY)),
                  full((Ci, Co, KX, KY)),
                  full((Co, KY, KY)), full((Co, KY, KY)),
                  full((Co, KX, KX)), full((Co, KX, KX)),
                  full((Co, Co, KX, KY)), full((Co, Co, KX, KY)),
                  full((Co, Co, KX, KY))],
        out_specs=(batched((Co, KX, KY)), batched((Co, KX, KY))),
        compiler_params=pltpu.CompilerParams(
            dimension_semantics=("parallel",)),
    )(xr, xi, wr, wd, ws, s1r, s1i, s2tr, s2ti, w1r, w1d, w1s)

    out = jax.lax.complex(outr, outi)                # (B, Co, KX, KY)
    return jnp.swapaxes(out, -1, -2)                 # (B, Co, KY, KX)


# ---------------- parameter construction (deterministic, in-script) ---------

def _uniform(key, shape, bound):
    return jax.random.uniform(key, shape, minval=-bound, maxval=bound,
                              dtype=jnp.float32)


def _complex_uniform(key, shape, bound):
    kr, ki = jax.random.split(key)
    return jax.lax.complex(_uniform(kr, shape, bound),
                           _uniform(ki, shape, bound))


def _complex_rand01(key, shape):
    kr, ki = jax.random.split(key)
    return jax.lax.complex(
        jax.random.uniform(kr, shape, dtype=jnp.float32),
        jax.random.uniform(ki, shape, dtype=jnp.float32))


def build_spectral_weight(key, ci, co, m1, m2):
    """Replicates Spectral_weights.get_weight(): (ci, co, 2*m1-1, m2)."""
    ky, kx = 2 * m1 - 1, m2
    k0, k1, k2 = jax.random.split(key, 3)
    b_y0 = 1.0 / math.sqrt(co * max(m1 - 1, 1) * 1)      # kaiming-like bound
    b_yx = 1.0 / math.sqrt(co * ky * max(kx - 1, 1))
    b_00 = 1.0 / math.sqrt(co)
    y0 = _complex_uniform(k0, (ci, co, m1 - 1, 1), b_y0)
    yposx = _complex_uniform(k1, (ci, co, ky, kx - 1), b_yx)
    w00 = _uniform(k2, (ci, co, 1, 1), b_00).astype(jnp.complex64)
    w = jnp.concatenate([y0, w00, jnp.conj(jnp.flip(y0, axis=-2))], axis=-2)
    w = jnp.concatenate([w, yposx], axis=-1)
    return w


# ---------------- forward pass (FFT glue in plain JAX) ----------------------

def _freq0_y(h):
    freqs = np.fft.fftshift(np.fft.fftfreq(h))
    return int(np.nonzero(freqs == 0)[0][0])


def spectral_int2d_forward(x, params, modes1, modes2):
    B, Ci, H, W = x.shape
    if 2 * modes1 - 1 > H:
        raise ValueError(f"modes1={modes1} too large for H={H}")
    if modes2 > W // 2 + 1:
        raise ValueError(f"modes2={modes2} too large for W={W}")
    f0 = _freq0_y(H)
    y0, y1 = f0 - modes1 + 1, f0 + modes1

    # TODO(synk): rfft2 / irfft2 / fftshift have no Pallas equivalent; done in XLA.
    x_ft = jnp.fft.fftshift(jnp.fft.rfft2(x), axes=-2)
    x_ft_slice = x_ft[..., y0:y1, :modes2]

    out_slice = spectral_mix_pallas(
        x_ft_slice, params["weights"], params["sm1"], params["sm2"],
        params["weights1"])

    Co = params["weights"].shape[1]
    out_ft = jnp.zeros((B, Co, H, W // 2 + 1), dtype=jnp.complex64)
    out_ft = out_ft.at[..., y0:y1, :modes2].set(out_slice)
    return jnp.fft.irfft2(jnp.fft.ifftshift(out_ft, axes=-2), s=(H, W))


def spectral_int2d_reference(x, params, modes1, modes2):
    """Pure-JAX reference mirroring the PyTorch forward, for validation."""
    B, Ci, H, W = x.shape
    f0 = _freq0_y(H)
    y0, y1 = f0 - modes1 + 1, f0 + modes1
    x_ft = jnp.fft.fftshift(jnp.fft.rfft2(x), axes=-2)
    xs = x_ft[..., y0:y1, :modes2]
    a = jnp.einsum('bixy,ioxy->boxy', xs, params["weights"])
    b1 = jnp.einsum('bcix,cio->bcox', a, params["sm1"])
    b2 = jnp.einsum('bcyi,cio->bcyo', b1, params["sm2"])
    d = jnp.einsum('bixy,ioxy->boxy', b2, params["weights1"])
    out_slice = a * d + a
    Co = params["weights"].shape[1]
    out_ft = jnp.zeros((B, Co, H, W // 2 + 1), dtype=jnp.complex64)
    out_ft = out_ft.at[..., y0:y1, :modes2].set(out_slice)
    return jnp.fft.irfft2(jnp.fft.ifftshift(out_ft, axes=-2), s=(H, W))


if __name__ == "__main__":
    B, C, H, W = 2, 4, 16, 16          # in_channels == out_channels (required
    modes1, modes2 = 4, 4              # by the module's second compl_mul2d)

    key = jax.random.PRNGKey(0)
    kx, kw, kw1, ks1, ks2 = jax.random.split(key, 5)

    x = jax.random.normal(kx, (B, C, H, W), dtype=jnp.float32)
    params = {
        "weights": build_spectral_weight(kw, C, C, modes1, modes2),
        "weights1": build_spectral_weight(kw1, C, C, modes1, modes2),
        "sm1": (1.0 / modes1) * _complex_rand01(
            ks1, (C, 2 * modes1 - 1, 2 * modes1 - 1)),
        "sm2": (1.0 / modes2) * _complex_rand01(ks2, (C, modes2, modes2)),
    }

    out = spectral_int2d_forward(x, params, modes1, modes2)
    out = jax.block_until_ready(out)

    ref = spectral_int2d_reference(x, params, modes1, modes2)
    np.testing.assert_allclose(np.asarray(out), np.asarray(ref),
                               rtol=1e-3, atol=1e-3)
    print("KERNEL_OK")
</pallas_src>

<mosaic_0001>
module attributes {stable_mosaic.version = 11 : i64} {
  func.func @spectral_mix_kernel(%arg0: i32, %arg1: memref<1x4x4x7xf32, #tpu.memory_space<vmem>>, %arg2: memref<1x4x4x7xf32, #tpu.memory_space<vmem>>, %arg3: memref<4x4x4x7xf32, #tpu.memory_space<vmem>>, %arg4: memref<4x4x4x7xf32, #tpu.memory_space<vmem>>, %arg5: memref<4x4x4x7xf32, #tpu.memory_space<vmem>>, %arg6: memref<4x7x7xf32, #tpu.memory_space<vmem>>, %arg7: memref<4x7x7xf32, #tpu.memory_space<vmem>>, %arg8: memref<4x4x4xf32, #tpu.memory_space<vmem>>, %arg9: memref<4x4x4xf32, #tpu.memory_space<vmem>>, %arg10: memref<4x4x4x7xf32, #tpu.memory_space<vmem>>, %arg11: memref<4x4x4x7xf32, #tpu.memory_space<vmem>>, %arg12: memref<4x4x4x7xf32, #tpu.memory_space<vmem>>, %arg13: memref<1x4x4x7xf32, #tpu.memory_space<vmem>>, %arg14: memref<1x4x4x7xf32, #tpu.memory_space<vmem>>) attributes {dimension_semantics = [#tpu.dimension_semantics<parallel>], iteration_bounds = array<i64: 2>, scalar_prefetch = 0 : i64, scratch_operands = 0 : i64, tpu.core_type = #tpu.core_type<tc>, window_params = [{transform_indices = @transform_0, window_bounds = array<i64: 1, 4, 4, 7>}, {transform_indices = @transform_1, window_bounds = array<i64: 1, 4, 4, 7>}, {pipeline_mode = #tpu.pipeline_mode<synchronous>, transform_indices = @transform_2, window_bounds = array<i64: 4, 4, 4, 7>}, {pipeline_mode = #tpu.pipeline_mode<synchronous>, transform_indices = @transform_3, window_bounds = array<i64: 4, 4, 4, 7>}, {pipeline_mode = #tpu.pipeline_mode<synchronous>, transform_indices = @transform_4, window_bounds = array<i64: 4, 4, 4, 7>}, {pipeline_mode = #tpu.pipeline_mode<synchronous>, transform_indices = @transform_5, window_bounds = array<i64: 4, 7, 7>}, {pipeline_mode = #tpu.pipeline_mode<synchronous>, transform_indices = @transform_6, window_bounds = array<i64: 4, 7, 7>}, {pipeline_mode = #tpu.pipeline_mode<synchronous>, transform_indices = @transform_7, window_bounds = array<i64: 4, 4, 4>}, {pipeline_mode = #tpu.pipeline_mode<synchronous>, transform_indices = @transform_8, window_bounds = array<i64: 4, 4, 4>}, {pipeline_mode = #tpu.pipeline_mode<synchronous>, transform_indices = @transform_9, window_bounds = array<i64: 4, 4, 4, 7>}, {pipeline_mode = #tpu.pipeline_mode<synchronous>, transform_indices = @transform_10, window_bounds = array<i64: 4, 4, 4, 7>}, {pipeline_mode = #tpu.pipeline_mode<synchronous>, transform_indices = @transform_11, window_bounds = array<i64: 4, 4, 4, 7>}, {transform_indices = @transform_12, window_bounds = array<i64: 1, 4, 4, 7>}, {transform_indices = @transform_13, window_bounds = array<i64: 1, 4, 4, 7>}]} {
    %c0 = arith.constant 0 : index
    %c0_0 = arith.constant 0 : index
    %c0_1 = arith.constant 0 : index
    %c0_2 = arith.constant 0 : index
    %0 = vector.load %arg1[%c0, %c0_0, %c0_1, %c0_2] : memref<1x4x4x7xf32, #tpu.memory_space<vmem>>, vector<1x4x4x7xf32>
    %1 = vector.shape_cast %0 : vector<1x4x4x7xf32> to vector<4x4x7xf32>
    %c0_3 = arith.constant 0 : index
    %c0_4 = arith.constant 0 : index
    %c0_5 = arith.constant 0 : index
    %c0_6 = arith.constant 0 : index
    %2 = vector.load %arg2[%c0_3, %c0_4, %c0_5, %c0_6] : memref<1x4x4x7xf32, #tpu.memory_space<vmem>>, vector<1x4x4x7xf32>
    %3 = vector.shape_cast %2 : vector<1x4x4x7xf32> to vector<4x4x7xf32>
    %cst = arith.constant 0.000000e+00 : f32
    %4 = vector.broadcast %cst : f32 to vector<4x4x7xf32>
    %cst_7 = arith.constant 0.000000e+00 : f32
    %5 = vector.broadcast %cst_7 : f32 to vector<4x4x7xf32>
    %6 = vector.extract_strided_slice %1 {offsets = [0, 0, 0], sizes = [1, 4, 7], strides = [1, 1, 1]} : vector<4x4x7xf32> to vector<1x4x7xf32>
    %7 = vector.shape_cast %6 : vector<1x4x7xf32> to vector<4x7xf32>
    %8 = vector.shape_cast %7 : vector<4x7xf32> to vector<1x4x7xf32>
    %9 = vector.extract_strided_slice %3 {offsets = [0, 0, 0], sizes = [1, 4, 7], strides = [1, 1, 1]} : vector<4x4x7xf32> to vector<1x4x7xf32>
    %10 = vector.shape_cast %9 : vector<1x4x7xf32> to vector<4x7xf32>
    %11 = vector.shape_cast %10 : vector<4x7xf32> to vector<1x4x7xf32>
    %c0_8 = arith.constant 0 : index
    %c0_9 = arith.constant 0 : index
    %c0_10 = arith.constant 0 : index
    %c0_11 = arith.constant 0 : index
    %12 = vector.load %arg3[%c0_8, %c0_9, %c0_10, %c0_11] : memref<4x4x4x7xf32, #tpu.memory_space<vmem>>, vector<1x4x4x7xf32>
    %13 = vector.shape_cast %12 : vector<1x4x4x7xf32> to vector<4x4x7xf32>
    %14 = arith.addf %8, %11 : vector<1x4x7xf32>
    %15 = vector.broadcast %14 : vector<1x4x7xf32> to vector<4x4x7xf32>
    %16 = arith.mulf %13, %15 : vector<4x4x7xf32>
    %c0_12 = arith.constant 0 : index
    %c0_13 = arith.constant 0 : index
    %c0_14 = arith.constant 0 : index
    %c0_15 = arith.constant 0 : index
    %17 = vector.load %arg5[%c0_12, %c0_13, %c0_14, %c0_15] : memref<4x4x4x7xf32, #tpu.memory_space<vmem>>, vector<1x4x4x7xf32>
    %18 = vector.shape_cast %17 : vector<1x4x4x7xf32> to vector<4x4x7xf32>
    %19 = vector.broadcast %11 : vector<1x4x7xf32> to vector<4x4x7xf32>
    %20 = arith.mulf %18, %19 : vector<4x4x7xf32>
    %21 = arith.subf %16, %20 : vector<4x4x7xf32>
    %22 = arith.addf %4, %21 : vector<4x4x7xf32>
    %c0_16 = arith.constant 0 : index
    %c0_17 = arith.constant 0 : index
    %c0_18 = arith.constant 0 : index
    %c0_19 = arith.constant 0 : index
    %23 = vector.load %arg4[%c0_16, %c0_17, %c0_18, %c0_19] : memref<4x4x4x7xf32, #tpu.memory_space<vmem>>, vector<1x4x4x7xf32>
    %24 = vector.shape_cast %23 : vector<1x4x4x7xf32> to vector<4x4x7xf32>
    %25 = vector.broadcast %8 : vector<1x4x7xf32> to vector<4x4x7xf32>
    %26 = arith.mulf %24, %25 : vector<4x4x7xf32>
    %27 = arith.addf %16, %26 : vector<4x4x7xf32>
    %28 = arith.addf %5, %27 : vector<4x4x7xf32>
    %29 = vector.extract_strided_slice %1 {offsets = [1, 0, 0], sizes = [1, 4, 7], strides = [1, 1, 1]} : vector<4x4x7xf32> to vector<1x4x7xf32>
    %30 = vector.shape_cast %29 : vector<1x4x7xf32> to vector<4x7xf32>
    %31 = vector.shape_cast %30 : vector<4x7xf32> to vector<1x4x7xf32>
    %32 = vector.extract_strided_slice %3 {offsets = [1, 0, 0], sizes = [1, 4, 7], strides = [1, 1, 1]} : vector<4x4x7xf32> to vector<1x4x7xf32>
    %33 = vector.shape_cast %32 : vector<1x4x7xf32> to vector<4x7xf32>
    %34 = vector.shape_cast %33 : vector<4x7xf32> to vector<1x4x7xf32>
    %c1 = arith.constant 1 : index
    %c0_20 = arith.constant 0 : index
    %c0_21 = arith.constant 0 : index
    %c0_22 = arith.constant 0 : index
    %35 = vector.load %arg3[%c1, %c0_20, %c0_21, %c0_22] : memref<4x4x4x7xf32, #tpu.memory_space<vmem>>, vector<1x4x4x7xf32>
    %36 = vector.shape_cast %35 : vector<1x4x4x7xf32> to vector<4x4x7xf32>
    %37 = arith.addf %31, %34 : vector<1x4x7xf32>
    %38 = vector.broadcast %37 : vector<1x4x7xf32> to vector<4x4x7xf32>
    %39 = arith.mulf %36, %38 : vector<4x4x7xf32>
    %c1_23 = arith.constant 1 : index
    %c0_24 = arith.constant 0 : index
    %c0_25 = arith.constant 0 : index
    %c0_26 = arith.constant 0 : index
    %40 = vector.load %arg5[%c1_23, %c0_24, %c0_25, %c0_26] : memref<4x4x4x7xf32, #tpu.memory_space<vmem>>, vector<1x4x4x7xf32>
    %41 = vector.shape_cast %40 : vector<1x4x4x7xf32> to vector<4x4x7xf32>
    %42 = vector.broadcast %34 : vector<1x4x7xf32> to vector<4x4x7xf32>
    %43 = arith.mulf %41, %42 : vector<4x4x7xf32>
    %44 = arith.subf %39, %43 : vector<4x4x7xf32>
    %45 = arith.addf %22, %44 : vector<4x4x7xf32>
    %c1_27 = arith.constant 1 : index
    %c0_28 = arith.constant 0 : index
    %c0_29 = arith.constant 0 : index
    %c0_30 = arith.constant 0 : index
    %46 = vector.load %arg4[%c1_27, %c0_28, %c0_29, %c0_30] : memref<4x4x4x7xf32, #tpu.memory_space<vmem>>, vector<1x4x4x7xf32>
    %47 = vector.shape_cast %46 : vector<1x4x4x7xf32> to vector<4x4x7xf32>
    %48 = vector.broadcast %31 : vector<1x4x7xf32> to vector<4x4x7xf32>
    %49 = arith.mulf %47, %48 : vector<4x4x7xf32>
    %50 = arith.addf %39, %49 : vector<4x4x7xf32>
    %51 = arith.addf %28, %50 : vector<4x4x7xf32>
    %52 = vector.extract_strided_slice %1 {offsets = [2, 0, 0], sizes = [1, 4, 7], strides = [1, 1, 1]} : vector<4x4x7xf32> to vector<1x4x7xf32>
    %53 = vector.shape_cast %52 : vector<1x4x7xf32> to vector<4x7xf32>
    %54 = vector.shape_cast %53 : vector<4x7xf32> to vector<1x4x7xf32>
    %55 = vector.extract_strided_slice %3 {offsets = [2, 0, 0], sizes = [1, 4, 7], strides = [1, 1, 1]} : vector<4x4x7xf32> to vector<1x4x7xf32>
    %56 = vector.shape_cast %55 : vector<1x4x7xf32> to vector<4x7xf32>
    %57 = vector.shape_cast %56 : vector<4x7xf32> to vector<1x4x7xf32>
    %c2 = arith.constant 2 : index
    %c0_31 = arith.constant 0 : index
    %c0_32 = arith.constant 0 : index
    %c0_33 = arith.constant 0 : index
    %58 = vector.load %arg3[%c2, %c0_31, %c0_32, %c0_33] : memref<4x4x4x7xf32, #tpu.memory_space<vmem>>, vector<1x4x4x7xf32>
    %59 = vector.shape_cast %58 : vector<1x4x4x7xf32> to vector<4x4x7xf32>
    %60 = arith.addf %54, %57 : vector<1x4x7xf32>
    %61 = vector.broadcast %60 : vector<1x4x7xf32> to vector<4x4x7xf32>
    %62 = arith.mulf %59, %61 : vector<4x4x7xf32>
    %c2_34 = arith.constant 2 : index
    %c0_35 = arith.constant 0 : index
    %c0_36 = arith.constant 0 : index
    %c0_37 = arith.constant 0 : index
    %63 = vector.load %arg5[%c2_34, %c0_35, %c0_36, %c0_37] : memref<4x4x4x7xf32, #tpu.memory_space<vmem>>, vector<1x4x4x7xf32>
    %64 = vector.shape_cast %63 : vector<1x4x4x7xf32> to vector<4x4x7xf32>
    %65 = vector.broadcast %57 : vector<1x4x7xf32> to vector<4x4x7xf32>
    %66 = arith.mulf %64, %65 : vector<4x4x7xf32>
    %67 = arith.subf %62, %66 : vector<4x4x7xf32>
    %68 = arith.addf %45, %67 : vector<4x4x7xf32>
    %c2_38 = arith.constant 2 : index
    %c0_39 = arith.constant 0 : index
    %c0_40 = arith.constant 0 : index
    %c0_41 = arith.constant 0 : index
    %69 = vector.load %arg4[%c2_38, %c0_39, %c0_40, %c0_41] : memref<4x4x4x7xf32, #tpu.memory_space<vmem>>, vector<1x4x4x7xf32>
    %70 = vector.shape_cast %69 : vector<1x4x4x7xf32> to vector<4x4x7xf32>
    %71 = vector.broadcast %54 : vector<1x4x7xf32> to vector<4x4x7xf32>
    %72 = arith.mulf %70, %71 : vector<4x4x7xf32>
    %73 = arith.addf %62, %72 : vector<4x4x7xf32>
    %74 = arith.addf %51, %73 : vector<4x4x7xf32>
    %75 = vector.extract_strided_slice %1 {offsets = [3, 0, 0], sizes = [1, 4, 7], strides = [1, 1, 1]} : vector<4x4x7xf32> to vector<1x4x7xf32>
    %76 = vector.shape_cast %75 : vector<1x4x7xf32> to vector<4x7xf32>
    %77 = vector.shape_cast %76 : vector<4x7xf32> to vector<1x4x7xf32>
    %78 = vector.extract_strided_slice %3 {offsets = [3, 0, 0], sizes = [1, 4, 7], strides = [1, 1, 1]} : vector<4x4x7xf32> to vector<1x4x7xf32>
    %79 = vector.shape_cast %78 : vector<1x4x7xf32> to vector<4x7xf32>
    %80 = vector.shape_cast %79 : vector<4x7xf32> to vector<1x4x7xf32>
    %c3 = arith.constant 3 : index
    %c0_42 = arith.constant 0 : index
    %c0_43 = arith.constant 0 : index
    %c0_44 = arith.constant 0 : index
    %81 = vector.load %arg3[%c3, %c0_42, %c0_43, %c0_44] : memref<4x4x4x7xf32, #tpu.memory_space<vmem>>, vector<1x4x4x7xf32>
    %82 = vector.shape_cast %81 : vector<1x4x4x7xf32> to vector<4x4x7xf32>
    %83 = arith.addf %77, %80 : vector<1x4x7xf32>
    %84 = vector.broadcast %83 : vector<1x4x7xf32> to vector<4x4x7xf32>
    %85 = arith.mulf %82, %84 : vector<4x4x7xf32>
    %c3_45 = arith.constant 3 : index
    %c0_46 = arith.constant 0 : index
    %c0_47 = arith.constant 0 : index
    %c0_48 = arith.constant 0 : index
    %86 = vector.load %arg5[%c3_45, %c0_46, %c0_47, %c0_48] : memref<4x4x4x7xf32, #tpu.memory_space<vmem>>, vector<1x4x4x7xf32>
    %87 = vector.shape_cast %86 : vector<1x4x4x7xf32> to vector<4x4x7xf32>
    %88 = vector.broadcast %80 : vector<1x4x7xf32> to vector<4x4x7xf32>
    %89 = arith.mulf %87, %88 : vector<4x4x7xf32>
    %90 = arith.subf %85, %89 : vector<4x4x7xf32>
    %91 = arith.addf %68, %90 : vector<4x4x7xf32>
    %c3_49 = arith.constant 3 : index
    %c0_50 = arith.constant 0 : index
    %c0_51 = arith.constant 0 : index
    %c0_52 = arith.constant 0 : index
    %92 = vector.load %arg4[%c3_49, %c0_50, %c0_51, %c0_52] : memref<4x4x4x7xf32, #tpu.memory_space<vmem>>, vector<1x4x4x7xf32>
    %93 = vector.shape_cast %92 : vector<1x4x4x7xf32> to vector<4x4x7xf32>
    %94 = vector.broadcast %77 : vector<1x4x7xf32> to vector<4x4x7xf32>
    %95 = arith.mulf %93, %94 : vector<4x4x7xf32>
    %96 = arith.addf %85, %95 : vector<4x4x7xf32>
    %97 = arith.addf %74, %96 : vector<4x4x7xf32>
    %c0_53 = arith.constant 0 : index
    %c0_54 = arith.constant 0 : index
    %c0_55 = arith.constant 0 : index
    %98 = vector.load %arg6[%c0_53, %c0_54, %c0_55] : memref<4x7x7xf32, #tpu.memory_space<vmem>>, vector<4x7x7xf32>
    %c0_56 = arith.constant 0 : index
    %c0_57 = arith.constant 0 : index
    %c0_58 = arith.constant 0 : index
    %99 = vector.load %arg7[%c0_56, %c0_57, %c0_58] : memref<4x7x7xf32, #tpu.memory_space<vmem>>, vector<4x7x7xf32>
    "tpu.trace_start"() <{level = 10 : i32, message = "cxi,cio->cxo"}> : () -> ()
    %cst_59 = arith.constant dense<0.000000e+00> : vector<4x4x7xf32>
    %100 = tpu.matmul %91, %98, %cst_59 {dimension_numbers = #tpu.dot_dimension_numbers<[2], [1], [1], [2], [0, 0, 0, 1, 1, 2], [0], [0]>} : vector<4x4x7xf32>, vector<4x7x7xf32>, vector<4x4x7xf32> -> vector<4x4x7xf32>
    %cst_60 = arith.constant dense<0.000000e+00> : vector<4x4x7xf32>
    %101 = tpu.matmul %97, %99, %cst_60 {dimension_numbers = #tpu.dot_dimension_numbers<[2], [1], [1], [2], [0, 0, 0, 1, 1, 2], [0], [0]>} : vector<4x4x7xf32>, vector<4x7x7xf32>, vector<4x4x7xf32> -> vector<4x4x7xf32>
    "tpu.trace_stop"() : () -> ()
    %102 = arith.subf %100, %101 : vector<4x4x7xf32>
    "tpu.trace_start"() <{level = 10 : i32, message = "cxi,cio->cxo"}> : () -> ()
    %cst_61 = arith.constant dense<0.000000e+00> : vector<4x4x7xf32>
    %103 = tpu.matmul %91, %99, %cst_61 {dimension_numbers = #tpu.dot_dimension_numbers<[2], [1], [1], [2], [0, 0, 0, 1, 1, 2], [0], [0]>} : vector<4x4x7xf32>, vector<4x7x7xf32>, vector<4x4x7xf32> -> vector<4x4x7xf32>
    %cst_62 = arith.constant dense<0.000000e+00> : vector<4x4x7xf32>
    %104 = tpu.matmul %97, %98, %cst_62 {dimension_numbers = #tpu.dot_dimension_numbers<[2], [1], [1], [2], [0, 0, 0, 1, 1, 2], [0], [0]>} : vector<4x4x7xf32>, vector<4x7x7xf32>, vector<4x4x7xf32> -> vector<4x4x7xf32>
    "tpu.trace_stop"() : () -> ()
    %105 = arith.addf %103, %104 : vector<4x4x7xf32>
    %c0_63 = arith.constant 0 : index
    %c0_64 = arith.constant 0 : index
    %c0_65 = arith.constant 0 : index
    %106 = vector.load %arg8[%c0_63, %c0_64, %c0_65] : memref<4x4x4xf32, #tpu.memory_space<vmem>>, vector<4x4x4xf32>
    %c0_66 = arith.constant 0 : index
    %c0_67 = arith.constant 0 : index
    %c0_68 = arith.constant 0 : index
    %107 = vector.load %arg9[%c0_66, %c0_67, %c0_68] : memref<4x4x4xf32, #tpu.memory_space<vmem>>, vector<4x4x4xf32>
    "tpu.trace_start"() <{level = 10 : i32, message = "coi,ciy->coy"}> : () -> ()
    %cst_69 = arith.constant dense<0.000000e+00> : vector<4x4x7xf32>
    %108 = tpu.matmul %106, %102, %cst_69 {dimension_numbers = #tpu.dot_dimension_numbers<[2], [1], [1], [2], [0, 0, 0, 1, 1, 2], [0], [0]>} : vector<4x4x4xf32>, vector<4x4x7xf32>, vector<4x4x7xf32> -> vector<4x4x7xf32>
    %cst_70 = arith.constant dense<0.000000e+00> : vector<4x4x7xf32>
    %109 = tpu.matmul %107, %105, %cst_70 {dimension_numbers = #tpu.dot_dimension_numbers<[2], [1], [1], [2], [0, 0, 0, 1, 1, 2], [0], [0]>} : vector<4x4x4xf32>, vector<4x4x7xf32>, vector<4x4x7xf32> -> vector<4x4x7xf32>
    "tpu.trace_stop"() : () -> ()
    %110 = arith.subf %108, %109 : vector<4x4x7xf32>
    "tpu.trace_start"() <{level = 10 : i32, message = "coi,ciy->coy"}> : () -> ()
    %cst_71 = arith.constant dense<0.000000e+00> : vector<4x4x7xf32>
    %111 = tpu.matmul %106, %105, %cst_71 {dimension_numbers = #tpu.dot_dimension_numbers<[2], [1], [1], [2], [0, 0, 0, 1, 1, 2], [0], [0]>} : vector<4x4x4xf32>, vector<4x4x7xf32>, vector<4x4x7xf32> -> vector<4x4x7xf32>
    %cst_72 = arith.constant dense<0.000000e+00> : vector<4x4x7xf32>
    %112 = tpu.matmul %107, %102, %cst_72 {dimension_numbers = #tpu.dot_dimension_numbers<[2], [1], [1], [2], [0, 0, 0, 1, 1, 2], [0], [0]>} : vector<4x4x4xf32>, vector<4x4x7xf32>, vector<4x4x7xf32> -> vector<4x4x7xf32>
    "tpu.trace_stop"() : () -> ()
    %113 = arith.addf %111, %112 : vector<4x4x7xf32>
    %cst_73 = arith.constant 0.000000e+00 : f32
    %114 = vector.broadcast %cst_73 : f32 to vector<4x4x7xf32>
    %cst_74 = arith.constant 0.000000e+00 : f32
    %115 = vector.broadcast %cst_74 : f32 to vector<4x4x7xf32>
    %116 = vector.extract_strided_slice %110 {offsets = [0, 0, 0], sizes = [1, 4, 7], strides = [1, 1, 1]} : vector<4x4x7xf32> to vector<1x4x7xf32>
    %117 = vector.shape_cast %116 : vector<1x4x7xf32> to vector<4x7xf32>
    %118 = vector.shape_cast %117 : vector<4x7xf32> to vector<1x4x7xf32>
    %119 = vector.extract_strided_slice %113 {offsets = [0, 0, 0], sizes = [1, 4, 7], strides = [1, 1, 1]} : vector<4x4x7xf32> to vector<1x4x7xf32>
    %120 = vector.shape_cast %119 : vector<1x4x7xf32> to vector<4x7xf32>
    %121 = vector.shape_cast %120 : vector<4x7xf32> to vector<1x4x7xf32>
    %c0_75 = arith.constant 0 : index
    %c0_76 = arith.constant 0 : index
    %c0_77 = arith.constant 0 : index
    %c0_78 = arith.constant 0 : index
    %122 = vector.load %arg10[%c0_75, %c0_76, %c0_77, %c0_78] : memref<4x4x4x7xf32, #tpu.memory_space<vmem>>, vector<1x4x4x7xf32>
    %123 = vector.shape_cast %122 : vector<1x4x4x7xf32> to vector<4x4x7xf32>
    %124 = arith.addf %118, %121 : vector<1x4x7xf32>
    %125 = vector.broadcast %124 : vector<1x4x7xf32> to vector<4x4x7xf32>
    %126 = arith.mulf %123, %125 : vector<4x4x7xf32>
    %c0_79 = arith.constant 0 : index
    %c0_80 = arith.constant 0 : index
    %c0_81 = arith.constant 0 : index
    %c0_82 = arith.constant 0 : index
    %127 = vector.load %arg12[%c0_79, %c0_80, %c0_81, %c0_82] : memref<4x4x4x7xf32, #tpu.memory_space<vmem>>, vector<1x4x4x7xf32>
    %128 = vector.shape_cast %127 : vector<1x4x4x7xf32> to vector<4x4x7xf32>
    %129 = vector.broadcast %121 : vector<1x4x7xf32> to vector<4x4x7xf32>
    %130 = arith.mulf %128, %129 : vector<4x4x7xf32>
    %131 = arith.subf %126, %130 : vector<4x4x7xf32>
    %132 = arith.addf %114, %131 : vector<4x4x7xf32>
    %c0_83 = arith.constant 0 : index
    %c0_84 = arith.constant 0 : index
    %c0_85 = arith.constant 0 : index
    %c0_86 = arith.constant 0 : index
    %133 = vector.load %arg11[%c0_83, %c0_84, %c0_85, %c0_86] : memref<4x4x4x7xf32, #tpu.memory_space<vmem>>, vector<1x4x4x7xf32>
    %134 = vector.shape_cast %133 : vector<1x4x4x7xf32> to vector<4x4x7xf32>
    %135 = vector.broadcast %118 : vector<1x4x7xf32> to vector<4x4x7xf32>
    %136 = arith.mulf %134, %135 : vector<4x4x7xf32>
    %137 = arith.addf %126, %136 : vector<4x4x7xf32>
    %138 = arith.addf %115, %137 : vector<4x4x7xf32>
    %139 = vector.extract_strided_slice %110 {offsets = [1, 0, 0], sizes = [1, 4, 7], strides = [1, 1, 1]} : vector<4x4x7xf32> to vector<1x4x7xf32>
    %140 = vector.shape_cast %139 : vector<1x4x7xf32> to vector<4x7xf32>
    %141 = vector.shape_cast %140 : vector<4x7xf32> to vector<1x4x7xf32>
    %142 = vector.extract_strided_slice %113 {offsets = [1, 0, 0], sizes = [1, 4, 7], strides = [1, 1, 1]} : vector<4x4x7xf32> to vector<1x4x7xf32>
    %143 = vector.shape_cast %142 : vector<1x4x7xf32> to vector<4x7xf32>
    %144 = vector.shape_cast %143 : vector<4x7xf32> to vector<1x4x7xf32>
    %c1_87 = arith.constant 1 : index
    %c0_88 = arith.constant 0 : index
    %c0_89 = arith.constant 0 : index
    %c0_90 = arith.constant 0 : index
    %145 = vector.load %arg10[%c1_87, %c0_88, %c0_89, %c0_90] : memref<4x4x4x7xf32, #tpu.memory_space<vmem>>, vector<1x4x4x7xf32>
    %146 = vector.shape_cast %145 : vector<1x4x4x7xf32> to vector<4x4x7xf32>
    %147 = arith.addf %141, %144 : vector<1x4x7xf32>
    %148 = vector.broadcast %147 : vector<1x4x7xf32> to vector<4x4x7xf32>
    %149 = arith.mulf %146, %148 : vector<4x4x7xf32>
    %c1_91 = arith.constant 1 : index
    %c0_92 = arith.constant 0 : index
    %c0_93 = arith.constant 0 : index
    %c0_94 = arith.constant 0 : index
    %150 = vector.load %arg12[%c1_91, %c0_92, %c0_93, %c0_94] : memref<4x4x4x7xf32, #tpu.memory_space<vmem>>, vector<1x4x4x7xf32>
    %151 = vector.shape_cast %150 : vector<1x4x4x7xf32> to vector<4x4x7xf32>
    %152 = vector.broadcast %144 : vector<1x4x7xf32> to vector<4x4x7xf32>
    %153 = arith.mulf %151, %152 : vector<4x4x7xf32>
    %154 = arith.subf %149, %153 : vector<4x4x7xf32>
    %155 = arith.addf %132, %154 : vector<4x4x7xf32>
    %c1_95 = arith.constant 1 : index
    %c0_96 = arith.constant 0 : index
    %c0_97 = arith.constant 0 : index
    %c0_98 = arith.constant 0 : index
    %156 = vector.load %arg11[%c1_95, %c0_96, %c0_97, %c0_98] : memref<4x4x4x7xf32, #tpu.memory_space<vmem>>, vector<1x4x4x7xf32>
    %157 = vector.shape_cast %156 : vector<1x4x4x7xf32> to vector<4x4x7xf32>
    %158 = vector.broadcast %141 : vector<1x4x7xf32> to vector<4x4x7xf32>
    %159 = arith.mulf %157, %158 : vector<4x4x7xf32>
    %160 = arith.addf %149, %159 : vector<4x4x7xf32>
    %161 = arith.addf %138, %160 : vector<4x4x7xf32>
    %162 = vector.extract_strided_slice %110 {offsets = [2, 0, 0], sizes = [1, 4, 7], strides = [1, 1, 1]} : vector<4x4x7xf32> to vector<1x4x7xf32>
    %163 = vector.shape_cast %162 : vector<1x4x7xf32> to vector<4x7xf32>
    %164 = vector.shape_cast %163 : vector<4x7xf32> to vector<1x4x7xf32>
    %165 = vector.extract_strided_slice %113 {offsets = [2, 0, 0], sizes = [1, 4, 7], strides = [1, 1, 1]} : vector<4x4x7xf32> to vector<1x4x7xf32>
    %166 = vector.shape_cast %165 : vector<1x4x7xf32> to vector<4x7xf32>
    %167 = vector.shape_cast %166 : vector<4x7xf32> to vector<1x4x7xf32>
    %c2_99 = arith.constant 2 : index
    %c0_100 = arith.constant 0 : index
    %c0_101 = arith.constant 0 : index
    %c0_102 = arith.constant 0 : index
    %168 = vector.load %arg10[%c2_99, %c0_100, %c0_101, %c0_102] : memref<4x4x4x7xf32, #tpu.memory_space<vmem>>, vector<1x4x4x7xf32>
    %169 = vector.shape_cast %168 : vector<1x4x4x7xf32> to vector<4x4x7xf32>
    %170 = arith.addf %164, %167 : vector<1x4x7xf32>
    %171 = vector.broadcast %170 : vector<1x4x7xf32> to vector<4x4x7xf32>
    %172 = arith.mulf %169, %171 : vector<4x4x7xf32>
    %c2_103 = arith.constant 2 : index
    %c0_104 = arith.constant 0 : index
    %c0_105 = arith.constant 0 : index
    %c0_106 = arith.constant 0 : index
    %173 = vector.load %arg12[%c2_103, %c0_104, %c0_105, %c0_106] : memref<4x4x4x7xf32, #tpu.memory_space<vmem>>, vector<1x4x4x7xf32>
    %174 = vector.shape_cast %173 : vector<1x4x4x7xf32> to vector<4x4x7xf32>
    %175 = vector.broadcast %167 : vector<1x4x7xf32> to vector<4x4x7xf32>
    %176 = arith.mulf %174, %175 : vector<4x4x7xf32>
    %177 = arith.subf %172, %176 : vector<4x4x7xf32>
    %178 = arith.addf %155, %177 : vector<4x4x7xf32>
    %c2_107 = arith.constant 2 : index
    %c0_108 = arith.constant 0 : index
    %c0_109 = arith.constant 0 : index
    %c0_110 = arith.constant 0 : index
    %179 = vector.load %arg11[%c2_107, %c0_108, %c0_109, %c0_110] : memref<4x4x4x7xf32, #tpu.memory_space<vmem>>, vector<1x4x4x7xf32>
    %180 = vector.shape_cast %179 : vector<1x4x4x7xf32> to vector<4x4x7xf32>
    %181 = vector.broadcast %164 : vector<1x4x7xf32> to vector<4x4x7xf32>
    %182 = arith.mulf %180, %181 : vector<4x4x7xf32>
    %183 = arith.addf %172, %182 : vector<4x4x7xf32>
    %184 = arith.addf %161, %183 : vector<4x4x7xf32>
    %185 = vector.extract_strided_slice %110 {offsets = [3, 0, 0], sizes = [1, 4, 7], strides = [1, 1, 1]} : vector<4x4x7xf32> to vector<1x4x7xf32>
    %186 = vector.shape_cast %185 : vector<1x4x7xf32> to vector<4x7xf32>
    %187 = vector.shape_cast %186 : vector<4x7xf32> to vector<1x4x7xf32>
    %188 = vector.extract_strided_slice %113 {offsets = [3, 0, 0], sizes = [1, 4, 7], strides = [1, 1, 1]} : vector<4x4x7xf32> to vector<1x4x7xf32>
    %189 = vector.shape_cast %188 : vector<1x4x7xf32> to vector<4x7xf32>
    %190 = vector.shape_cast %189 : vector<4x7xf32> to vector<1x4x7xf32>
    %c3_111 = arith.constant 3 : index
    %c0_112 = arith.constant 0 : index
    %c0_113 = arith.constant 0 : index
    %c0_114 = arith.constant 0 : index
    %191 = vector.load %arg10[%c3_111, %c0_112, %c0_113, %c0_114] : memref<4x4x4x7xf32, #tpu.memory_space<vmem>>, vector<1x4x4x7xf32>
    %192 = vector.shape_cast %191 : vector<1x4x4x7xf32> to vector<4x4x7xf32>
    %193 = arith.addf %187, %190 : vector<1x4x7xf32>
    %194 = vector.broadcast %193 : vector<1x4x7xf32> to vector<4x4x7xf32>
    %195 = arith.mulf %192, %194 : vector<4x4x7xf32>
    %c3_115 = arith.constant 3 : index
    %c0_116 = arith.constant 0 : index
    %c0_117 = arith.constant 0 : index
    %c0_118 = arith.constant 0 : index
    %196 = vector.load %arg12[%c3_115, %c0_116, %c0_117, %c0_118] : memref<4x4x4x7xf32, #tpu.memory_space<vmem>>, vector<1x4x4x7xf32>
    %197 = vector.shape_cast %196 : vector<1x4x4x7xf32> to vector<4x4x7xf32>
    %198 = vector.broadcast %190 : vector<1x4x7xf32> to vector<4x4x7xf32>
    %199 = arith.mulf %197, %198 : vector<4x4x7xf32>
    %200 = arith.subf %195, %199 : vector<4x4x7xf32>
    %201 = arith.addf %178, %200 : vector<4x4x7xf32>
    %c3_119 = arith.constant 3 : index
    %c0_120 = arith.constant 0 : index
    %c0_121 = arith.constant 0 : index
    %c0_122 = arith.constant 0 : index
    %202 = vector.load %arg11[%c3_119, %c0_120, %c0_121, %c0_122] : memref<4x4x4x7xf32, #tpu.memory_space<vmem>>, vector<1x4x4x7xf32>
    %203 = vector.shape_cast %202 : vector<1x4x4x7xf32> to vector<4x4x7xf32>
    %204 = vector.broadcast %187 : vector<1x4x7xf32> to vector<4x4x7xf32>
    %205 = arith.mulf %203, %204 : vector<4x4x7xf32>
    %206 = arith.addf %195, %205 : vector<4x4x7xf32>
    %207 = arith.addf %184, %206 : vector<4x4x7xf32>
    %cst_123 = arith.constant 1.000000e+00 : f32
    %208 = vector.broadcast %cst_123 : f32 to vector<4x4x7xf32>
    %209 = arith.addf %201, %208 : vector<4x4x7xf32>
    %210 = arith.mulf %91, %209 : vector<4x4x7xf32>
    %211 = arith.mulf %97, %207 : vector<4x4x7xf32>
    %212 = arith.subf %210, %211 : vector<4x4x7xf32>
    %c0_124 = arith.constant 0 : index
    %c0_125 = arith.constant 0 : index
    %c0_126 = arith.constant 0 : index
    %c0_127 = arith.constant 0 : index
    %213 = vector.load %arg13[%c0_124, %c0_125, %c0_126, %c0_127] : memref<1x4x4x7xf32, #tpu.memory_space<vmem>>, vector<1x4x4x7xf32>
    %214 = vector.shape_cast %213 : vector<1x4x4x7xf32> to vector<4x4x7xf32>
    %215 = vector.shape_cast %212 : vector<4x4x7xf32> to vector<1x4x4x7xf32>
    tpu.vector_store %arg13[%c0_124, %c0_125, %c0_126, %c0_127], %215 {strides = array<i32>} : memref<1x4x4x7xf32, #tpu.memory_space<vmem>>, vector<1x4x4x7xf32>,
    %216 = arith.mulf %91, %207 : vector<4x4x7xf32>
    %217 = arith.mulf %97, %209 : vector<4x4x7xf32>
    %218 = arith.addf %216, %217 : vector<4x4x7xf32>
    %c0_128 = arith.constant 0 : index
    %c0_129 = arith.constant 0 : index
    %c0_130 = arith.constant 0 : index
    %c0_131 = arith.constant 0 : index
    %219 = vector.load %arg14[%c0_128, %c0_129, %c0_130, %c0_131] : memref<1x4x4x7xf32, #tpu.memory_space<vmem>>, vector<1x4x4x7xf32>
    %220 = vector.shape_cast %219 : vector<1x4x4x7xf32> to vector<4x4x7xf32>
    %221 = vector.shape_cast %218 : vector<4x4x7xf32> to vector<1x4x4x7xf32>
    tpu.vector_store %arg14[%c0_128, %c0_129, %c0_130, %c0_131], %221 {strides = array<i32>} : memref<1x4x4x7xf32, #tpu.memory_space<vmem>>, vector<1x4x4x7xf32>,
    return
  }
  func.func @transform_0(%arg0: i32) -> (i32, i32, i32, i32) {
    %c0_i32 = arith.constant 0 : i32
    %c0_i32_0 = arith.constant 0 : i32
    %c0_i32_1 = arith.constant 0 : i32
    %c0_i32_2 = arith.constant 0 : i32
    return %arg0, %c0_i32, %c0_i32_0, %c0_i32_1 : i32, i32, i32, i32
  }
  func.func @transform_1(%arg0: i32) -> (i32, i32, i32, i32) {
    %c0_i32 = arith.constant 0 : i32
    %c0_i32_0 = arith.constant 0 : i32
    %c0_i32_1 = arith.constant 0 : i32
    %c0_i32_2 = arith.constant 0 : i32
    return %arg0, %c0_i32, %c0_i32_0, %c0_i32_1 : i32, i32, i32, i32
  }
  func.func @transform_2(%arg0: i32) -> (i32, i32, i32, i32) {
    %c0_i32 = arith.constant 0 : i32
    %c0_i32_0 = arith.constant 0 : i32
    %c0_i32_1 = arith.constant 0 : i32
    %c0_i32_2 = arith.constant 0 : i32
    %c0_i32_3 = arith.constant 0 : i32
    return %c0_i32, %c0_i32_0, %c0_i32_1, %c0_i32_2 : i32, i32, i32, i32
  }
  func.func @transform_3(%arg0: i32) -> (i32, i32, i32, i32) {
    %c0_i32 = arith.constant 0 : i32
    %c0_i32_0 = arith.constant 0 : i32
    %c0_i32_1 = arith.constant 0 : i32
    %c0_i32_2 = arith.constant 0 : i32
    %c0_i32_3 = arith.constant 0 : i32
    return %c0_i32, %c0_i32_0, %c0_i32_1, %c0_i32_2 : i32, i32, i32, i32
  }
  func.func @transform_4(%arg0: i32) -> (i32, i32, i32, i32) {
    %c0_i32 = arith.constant 0 : i32
    %c0_i32_0 = arith.constant 0 : i32
    %c0_i32_1 = arith.constant 0 : i32
    %c0_i32_2 = arith.constant 0 : i32
    %c0_i32_3 = arith.constant 0 : i32
    return %c0_i32, %c0_i32_0, %c0_i32_1, %c0_i32_2 : i32, i32, i32, i32
  }
  func.func @transform_5(%arg0: i32) -> (i32, i32, i32) {
    %c0_i32 = arith.constant 0 : i32
    %c0_i32_0 = arith.constant 0 : i32
    %c0_i32_1 = arith.constant 0 : i32
    %c0_i32_2 = arith.constant 0 : i32
    return %c0_i32, %c0_i32_0, %c0_i32_1 : i32, i32, i32
  }
  func.func @transform_6(%arg0: i32) -> (i32, i32, i32) {
    %c0_i32 = arith.constant 0 : i32
    %c0_i32_0 = arith.constant 0 : i32
    %c0_i32_1 = arith.constant 0 : i32
    %c0_i32_2 = arith.constant 0 : i32
    return %c0_i32, %c0_i32_0, %c0_i32_1 : i32, i32, i32
  }
  func.func @transform_7(%arg0: i32) -> (i32, i32, i32) {
    %c0_i32 = arith.constant 0 : i32
    %c0_i32_0 = arith.constant 0 : i32
    %c0_i32_1 = arith.constant 0 : i32
    %c0_i32_2 = arith.constant 0 : i32
    return %c0_i32, %c0_i32_0, %c0_i32_1 : i32, i32, i32
  }
  func.func @transform_8(%arg0: i32) -> (i32, i32, i32) {
    %c0_i32 = arith.constant 0 : i32
    %c0_i32_0 = arith.constant 0 : i32
    %c0_i32_1 = arith.constant 0 : i32
    %c0_i32_2 = arith.constant 0 : i32
    return %c0_i32, %c0_i32_0, %c0_i32_1 : i32, i32, i32
  }
  func.func @transform_9(%arg0: i32) -> (i32, i32, i32, i32) {
    %c0_i32 = arith.constant 0 : i32
    %c0_i32_0 = arith.constant 0 : i32
    %c0_i32_1 = arith.constant 0 : i32
    %c0_i32_2 = arith.constant 0 : i32
    %c0_i32_3 = arith.constant 0 : i32
    return %c0_i32, %c0_i32_0, %c0_i32_1, %c0_i32_2 : i32, i32, i32, i32
  }
  func.func @transform_10(%arg0: i32) -> (i32, i32, i32, i32) {
    %c0_i32 = arith.constant 0 : i32
    %c0_i32_0 = arith.constant 0 : i32
    %c0_i32_1 = arith.constant 0 : i32
    %c0_i32_2 = arith.constant 0 : i32
    %c0_i32_3 = arith.constant 0 : i32
    return %c0_i32, %c0_i32_0, %c0_i32_1, %c0_i32_2 : i32, i32, i32, i32
  }
  func.func @transform_11(%arg0: i32) -> (i32, i32, i32, i32) {
    %c0_i32 = arith.constant 0 : i32
    %c0_i32_0 = arith.constant 0 : i32
    %c0_i32_1 = arith.constant 0 : i32
    %c0_i32_2 = arith.constant 0 : i32
    %c0_i32_3 = arith.constant 0 : i32
    return %c0_i32, %c0_i32_0, %c0_i32_1, %c0_i32_2 : i32, i32, i32, i32
  }
  func.func @transform_12(%arg0: i32) -> (i32, i32, i32, i32) {
    %c0_i32 = arith.constant 0 : i32
    %c0_i32_0 = arith.constant 0 : i32
    %c0_i32_1 = arith.constant 0 : i32
    %c0_i32_2 = arith.constant 0 : i32
    return %arg0, %c0_i32, %c0_i32_0, %c0_i32_1 : i32, i32, i32, i32
  }
  func.func @transform_13(%arg0: i32) -> (i32, i32, i32, i32) {
    %c0_i32 = arith.constant 0 : i32
    %c0_i32_0 = arith.constant 0 : i32
    %c0_i32_1 = arith.constant 0 : i32
    %c0_i32_2 = arith.constant 0 : i32
    return %arg0, %c0_i32, %c0_i32_0, %c0_i32_1 : i32, i32, i32, i32
  }
}

</mosaic_0001>

<bundles_post_ra>
// kernel: tpu_custom_call.1
= control target key start
LH: loop header
LB: loop body
LE: loop exit
PB: predicated region body
PF: predicated region fallthrough
CT: control target
= control target key end

     0   :  { %s5395_s0 = inlined_call_operand.hbm [shape: f32[2,4,4,7], index: 0, kind: input, shape index: {}]   ;;  %s5396_s1 = inlined_call_operand.hbm [shape: f32[2,4,4,7], index: 1, kind: input, shape index: {}]   ;;  %s5397_s2 = inlined_call_operand.vmem [shape: f32[4,4,4,7], index: 2, kind: input, shape index: {}]   ;;  %s5398_s3 = inlined_call_operand.vmem [shape: f32[4,4,4,7], index: 3, kind: input, shape index: {}]   ;;  %s5399_s4 = inlined_call_operand.hbm [shape: f32[4,4,4,7], index: 4, kind: input, shape index: {}]   ;;  %s5400_s5 = inlined_call_operand.vmem [shape: f32[4,7,7], index: 5, kind: input, shape index: {}]   ;;  %s5401_s6 = inlined_call_operand.vmem [shape: f32[4,7,7], index: 6, kind: input, shape index: {}]   ;;  %s5402_s7 = inlined_call_operand.vmem [shape: f32[4,4,4], index: 7, kind: input, shape index: {}]   ;;  %s5403_s8 = inlined_call_operand.hbm [shape: f32[4,4,4], index: 8, kind: input, shape index: {}]   ;;  %s5404_s9 = inlined_call_operand.hbm [shape: f32[4,4,4,7], index: 9, kind: input, shape index: {}]   ;;  %s5405_s10 = inlined_call_operand.hbm [shape: f32[4,4,4,7], index: 10, kind: input, shape index: {}]   ;;  %s5406_s11 = inlined_call_operand.hbm [shape: f32[4,4,4,7], index: 11, kind: input, shape index: {}]   ;;  %s5407_s12 = inlined_call_operand.hbm [shape: f32[2,4,4,7], index: 12, kind: output, shape index: {0}]   ;;  %s5408_s13 = inlined_call_operand.hbm [shape: f32[2,4,4,7], index: 13, kind: output, shape index: {1}]  }
   0x1   :  { %5421 = sst [smem:[#allocation25_spill]] %s5395_s0 }
   0x2   :  { %5422 = sst [smem:[#allocation26_spill]] %s5398_s3 }
   0x3   :  { %5423 = sst [smem:[#allocation27_spill]] %s5399_s4 }
   0x4   :  { %5424 = sst [smem:[#allocation28_spill]] %s5401_s6 }
   0x5   :  { %5425 = sst [smem:[#allocation29_spill]] %s5402_s7 }
   0x6   :  { %5426 = sst [smem:[#allocation30_spill]] %s5403_s8 }
   0x7   :  { %5427 = sst [smem:[#allocation31_spill]] %s5404_s9 }
   0x8   :  { %5428 = sst [smem:[#allocation32_spill]] %s5405_s10 }
   0x9   :  { %5429 = sst [smem:[#allocation33_spill]] %s5406_s11 }
   0xa   :  { %5430 = sst [smem:[#allocation34_spill]] %s5407_s12 }
   0xb   :  { %5431 = sst [smem:[#allocation35_spill]] %s5408_s13 }
   0xc   :  { %19 = vsyncpa [#allocation3], 0 }
   0xd   :  { %21 = vsyncpa [#allocation3 + $0x1], 0 }
   0xe   :  { %22 = vsyncpa [#allocation6], 0 }
   0xf   :  { %24 = vsyncpa [#allocation6 + $0x1], 0 }
  0x10   :  { %25 = vsyncpa [#allocation9], 0 }
  0x11   :  { %26 = vsyncpa [#allocation12], 0 }
  0x12   :  { %27 = vsyncpa [#allocation4], 0 }
  0x13   :  { %29 = vsyncpa [#allocation4 + $0x1], 0 }
  0x14   :  { %30 = vsyncpa [#allocation16], 0 }
  0x15   :  { %32 = vsyncpa [#allocation16 + $0x1], 0  ;;  %s4425_s25 = smov 0   ;;  %s4427_s26 = smov 0  }
  0x16   :  { %s4429_s27 = smov 0   ;;  %s4431_s28 = smov 0  }
  0x17 LB: > { %s4340_s29 = smov [#allocation7]   ;;  %s4446_s14 = sadd.s32 4294967295, %s4338_s28   ;;  %s4338_s28 = sphi %s4431_s28, %s5468_s28   ;;  %s4334_s27 = sphi %s4429_s27, %s5467_s27   ;;  %s4330_s26 = sphi %s4427_s26, %s5466_s26   ;;  %s4326_s25 = sphi %s4425_s25, %s5465_s25  }
  0x18   : > { %s375_s30 = sshll.u32 %s4340_s29, 4  ;;  %p3548_p0 = scmp.ge.s32.totalorder %s4338_s28, 1  ;;  %s4451_s30 = int_to_ptr.vmem [resolvable:$true] %s375_s30 }
  0x19   : > { %p5414_p1 = scmp.eq.s32.totalorder %s4446_s14, 0  ;;  %p357_p2 = scmp.lt.s32.totalorder %s4338_s28, 3 }
  0x1a   : > { %s4341_s16 = smov [#allocation8]   ;;  %s4342_s19 = smov [#allocation11]  }
  0x1b   : > { %p4453_p3 = pnand %p3548_p0, %p357_p2  ;;  %s397_s17 = sshll.u32 %s4341_s16, 4  ;;  %s4466_s17 = int_to_ptr.vmem [resolvable:$true] %s397_s17 }
  0x1c   : > { %s423_s20 = sshll.u32 %s4342_s19, 4  ;;  %s5434_s4 = sld [smem:[#allocation27_spill]]  ;;  %s4468_s20 = int_to_ptr.vmem [resolvable:$true] %s423_s20 }
  0x1d   : > { %s5432_s15 = scalar_select %p4453_p3, 1, 0 }
  0x1e   : > { %p3939_p5 = pneg %p4453_p3 }
  0x20   : > { %p4462_p6 = pnand %p3939_p5, %p5414_p1 }
  0x22   : > { %s4024_s23 = scalar_lea.hbm %s5434_s4, 1024  ;;  %p4478_p8 = pneg %p4462_p6 }
  0x23   : > { %p4025_p7 = scmp.ne.s32.totalorder %s5434_s4, %s4024_s23  ;;  %p4031_p11 = scmp.lt.u32.totalorder %s4024_s23, %s5434_s4 }
  0x25   : > { %p4027_p9 = pnand %p4478_p8, %p4025_p7 }
  0x27   : > { %p4028_p10 = pneg %p4027_p9 }
  0x29   : > { %p4033_p12 = pnand %p4031_p11, %p4028_p10 }
  0x2b   : > { %4036 = shalt.err (!%p4033_p12)
}
  0x2c   : > { %s4037_s21 = scalar_lea.vmem %s4451_s30, 1024  ;;  %p4045_p5 = scmp.lt.s32.totalorder %s4451_s30, %s4451_s30 }
  0x2d   : > { %p4038_p13 = scmp.ne.s32.totalorder %s4451_s30, %s4037_s21  ;;  %p4046_p4 = scmp.lt.s32.totalorder %s4037_s21, %s4037_s21 }
  0x2f   : > { %p4040_p0 = pnand %p4038_p13, %p4478_p8  ;;  %p4047_p7 = por %p4046_p4, %p4045_p5 }
  0x31   : > { %p4041_p2 = pneg %p4040_p0 }
  0x33   : > { %p4048_p9 = pnand %p4047_p7, %p4041_p2 }
  0x35   : > { %4051 = shalt.err (!%p4048_p9)
}
  0x36   : > { %s5416_s22 = smov 64   ;;  %s5418_s13 = smov 4  }
  0x37   : > { %3942 = dma.hbm_to_vmem [thread:$0]  (!%p4462_p6), %s5434_s4, 1024, %s4451_s30, [#allocation6], %s5416_s22, %s5416_s22, %s5418_s13  }
  0x38   : > { %s5436_s8 = sld [smem:[#allocation30_spill]] }
  0x3e   : > { %s4052_s21 = scalar_lea.hbm %s5436_s8, 256 }
  0x3f   : > { %p4053_p4 = scmp.ne.s32.totalorder %s5436_s8, %s4052_s21  ;;  %p4059_p12 = scmp.lt.u32.totalorder %s4052_s21, %s5436_s8 }
  0x41   : > { %p4055_p10 = pnand %p4053_p4, %p4478_p8 }
  0x43   : > { %p4056_p11 = pneg %p4055_p10 }
  0x45   : > { %p4061_p13 = pnand %p4059_p12, %p4056_p11 }
  0x47   : > { %4064 = shalt.err (!%p4061_p13)
}
  0x48   : > { %s4065_s30 = scalar_lea.vmem %s4466_s17, 256  ;;  %p4073_p7 = scmp.lt.s32.totalorder %s4466_s17, %s4466_s17 }
  0x49   : > { %p4066_p0 = scmp.ne.s32.totalorder %s4466_s17, %s4065_s30  ;;  %p4074_p9 = scmp.lt.s32.totalorder %s4065_s30, %s4065_s30 }
  0x4b   : > { %p4068_p2 = pnand %p4066_p0, %p4478_p8  ;;  %p4075_p4 = por %p4074_p9, %p4073_p7 }
  0x4d   : > { %p4069_p5 = pneg %p4068_p2 }
  0x4f   : > { %p4076_p10 = pnand %p4075_p4, %p4069_p5 }
  0x51   : > { %4079 = shalt.err (!%p4076_p10)
}
  0x52   : > { %3945 = dma.hbm_to_vmem [thread:$0]  (!%p4462_p6), %s5436_s8, 256, %s4466_s17, [#allocation9], %s5416_s22, %s5416_s22, %s5418_s13  }
  0x53   : > { %s5437_s10 = sld [smem:[#allocation32_spill]] }
  0x59   : > { %s4080_s23 = scalar_lea.hbm %s5437_s10, 1024 }
  0x5a   : > { %p4081_p11 = scmp.ne.s32.totalorder %s5437_s10, %s4080_s23  ;;  %p4087_p0 = scmp.lt.u32.totalorder %s4080_s23, %s5437_s10 }
  0x5c   : > { %p4083_p12 = pnand %p4081_p11, %p4478_p8 }
  0x5e   : > { %p4084_p13 = pneg %p4083_p12 }
  0x60   : > { %p4089_p2 = pnand %p4087_p0, %p4084_p13 }
  0x62   : > { %4092 = shalt.err (!%p4089_p2)
}
  0x63   : > { %s4093_s17 = scalar_lea.vmem %s4468_s20, 1024  ;;  %p4101_p4 = scmp.lt.s32.totalorder %s4468_s20, %s4468_s20 }
  0x64   : > { %p4094_p5 = scmp.ne.s32.totalorder %s4468_s20, %s4093_s17  ;;  %p4102_p10 = scmp.lt.s32.totalorder %s4093_s17, %s4093_s17 }
  0x66   : > { %p4096_p7 = pnand %p4094_p5, %p4478_p8  ;;  %p4103_p11 = por %p4102_p10, %p4101_p4 }
  0x68   : > { %p4097_p9 = pneg %p4096_p7 }
  0x6a   : > { %p4104_p12 = pnand %p4103_p11, %p4097_p9 }
  0x6c   : > { %4107 = shalt.err (!%p4104_p12)
}
  0x6d   : > { %3951 = dma.hbm_to_vmem [thread:$0]  (!%p4462_p6), %s5437_s10, 1024, %s4468_s20, [#allocation12], %s5416_s22, %s5416_s22, %s5418_s13  }
  0x6e   : > { %s4345_s6 = smov [#allocation10]   ;;  %s4346_s12 = smov [#allocation13]  }
  0x6f   : > { %s410_s7 = sshll.u32 %s4345_s6, 4  ;;  %s436_s23 = sshll.u32 %s4346_s12, 4  ;;  %s411_s7 = int_to_ptr.vmem [resolvable:$true] %s410_s7  ;;  %s437_s23 = int_to_ptr.vmem [resolvable:$true] %s436_s23 }
  0x70   : > { %s5438_s9 = sld [smem:[#allocation31_spill]] }
  0x76   : > { %s4108_s19 = scalar_lea.hbm %s5438_s9, 1024 }
  0x77   : > { %p4109_p13 = scmp.ne.s32.totalorder %s5438_s9, %s4108_s19  ;;  %p4115_p5 = scmp.lt.u32.totalorder %s4108_s19, %s5438_s9 }
  0x79   : > { %p4111_p0 = pnand %p4109_p13, %p4478_p8 }
  0x7b   : > { %p4112_p2 = pneg %p4111_p0 }
  0x7d   : > { %p4117_p7 = pnand %p4115_p5, %p4112_p2 }
  0x7f   : > { %4120 = shalt.err (!%p4117_p7)
}
  0x80   : > { %s4121_s20 = scalar_lea.vmem %s411_s7, 1024  ;;  %p4129_p11 = scmp.lt.s32.totalorder %s411_s7, %s411_s7 }
  0x81   : > { %p4122_p9 = scmp.ne.s32.totalorder %s411_s7, %s4121_s20  ;;  %p4130_p12 = scmp.lt.s32.totalorder %s4121_s20, %s4121_s20 }
  0x83   : > { %p4124_p4 = pnand %p4122_p9, %p4478_p8  ;;  %p4131_p1 = por %p4130_p12, %p4129_p11 }
  0x85   : > { %p4125_p10 = pneg %p4124_p4 }
  0x87   : > { %p4132_p3 = pnand %p4131_p1, %p4125_p10 }
  0x89   : > { %4135 = shalt.err (!%p4132_p3)
}
  0x8a   : > { %3948 = dma.hbm_to_vmem [thread:$0]  (!%p4462_p6), %s5438_s9, 1024, %s411_s7, [#allocation9], %s5416_s22, %s5416_s22, %s5418_s13  }
  0x8b   : > { %s5439_s11 = sld [smem:[#allocation33_spill]] }
  0x91   : > { %s4136_s24 = scalar_lea.hbm %s5439_s11, 1024 }
  0x92   : > { %p4137_p1 = scmp.ne.s32.totalorder %s5439_s11, %s4136_s24  ;;  %p4143_p0 = scmp.lt.u32.totalorder %s4136_s24, %s5439_s11 }
  0x94   : > { %p4139_p3 = pnand %p4137_p1, %p4478_p8 }
  0x96   : > { %p4140_p13 = pneg %p4139_p3 }
  0x98   : > { %p4145_p2 = pnand %p4143_p0, %p4140_p13 }
  0x9a   : > { %4148 = shalt.err (!%p4145_p2)
}
  0x9b   : > { %s4149_s30 = scalar_lea.vmem %s437_s23, 1024  ;;  %p4157_p4 = scmp.lt.s32.totalorder %s437_s23, %s437_s23 }
  0x9c   : > { %p4150_p5 = scmp.ne.s32.totalorder %s437_s23, %s4149_s30  ;;  %p4158_p10 = scmp.lt.s32.totalorder %s4149_s30, %s4149_s30 }
  0x9e   : > { %p4152_p7 = pnand %p4150_p5, %p4478_p8  ;;  %p4159_p11 = por %p4158_p10, %p4157_p4 }
  0xa0   : > { %p4153_p9 = pneg %p4152_p7 }
  0xa2   : > { %p4160_p12 = pnand %p4159_p11, %p4153_p9 }
  0xa4   : > { %4163 = shalt.err (!%p4160_p12)
}
  0xa5   : > { %3954 = dma.hbm_to_vmem [thread:$0]  (!%p4462_p6), %s5439_s11, 1024, %s437_s23, [#allocation12], %s5416_s22, %s5416_s22, %s5418_s13  }
  0xa6   : > { %s3547_s18 = sadd.s32 4294967294, %s4338_s28   ;;  %s4598_s16 = sadd.s32 1, %s4338_s28  }
  0xa7   : > { %s45_s4 = sadd.s32 1, %s4334_s27  ;;  %s42_s3 = ssub.s32 %s4338_s28, %s4598_s16 }
  0xa8   : > { %p52_p8 = scmp.ne.s32.totalorder %s4334_s27, %s4330_s26  ;;  %p43_p1 = scmp.eq.s32.totalorder %s42_s3, 0 }
  0xa9   : > { %p53_p3 = scmp.eq.s32.totalorder %s4338_s28, 0  ;;  %p58_p13 = scmp.ne.s32.totalorder %s4330_s26, %s4326_s25 }
  0xaa   : > { %p318_p0 = scmp.eq.s32.totalorder %s4446_s14, 1  ;;  %p5441_p5 = scmp.eq.s32.totalorder %s4446_s14, 0 }
  0xab   : > { %s4610_s6 = scalar_select %p43_p1, %s4334_s27, %s45_s4  }
  0xac   : > { %p54_p2 = por %p53_p3, %p52_p8  ;;  %p4614_p7 = por %p5441_p5, %p58_p13 }
  0xad   : > { %5440 = sst [smem:[#allocation24_spill]] %s4610_s6  ;;  %p4618_p6 = por %p318_p0, %p52_p8 }
  0xae   : > { %p324_p9 = scmp.eq.s32.totalorder %s3547_s18, 1  ;;  %p3974_p4 = scmp.lt.s32.totalorder %s4338_s28, 2 }
  0xaf   : > { %s5443_s23 = scalar_select %p4618_p6, 1, 0 }
  0xb0   : > { %s450_s24 = sand.u32 1, %s4334_s27   ;;  %p4624_p10 = por %p324_p9, %p58_p13 }
  0xb1   : > { %s4628_s19 = sshll.u32 %s450_s24, 4  ;;  %s3667_s21 = sshll.u32 %s4338_s28, 8 }
  0xb2   : > { %s5444_s29 = scalar_select %p4624_p10, 1, 0 }
  0xb3   : > { %s5445_s0 = sld [smem:[#allocation25_spill]]  ;;  %s454_s20 = scalar_lea.vmem [#allocation2], %s4628_s19 }
  0xb4   : > { %s461_s18 = sshll.u32 %s454_s20, 4  ;;  %p4637_p11 = pnand %p3974_p4, %p54_p2  ;;  %s4641_s18 = int_to_ptr.vmem [resolvable:$true] %s461_s18 }
  0xb5   : > { %s4646_s17 = scalar_lea.hbm %s5396_s1, %s3667_s21  ;;  %s4648_s30 = scalar_lea.sflag [#allocation3], %s450_s24 }
  0xb6   : > { %p4166_p8 = pneg %p4637_p11 }
  0xb9   : > { %s4634_s7 = scalar_lea.hbm %s5445_s0, %s3667_s21  ;;  %s4169_s9 = scalar_lea.hbm %s5445_s0, 512 }
  0xba   : > { %s4164_s13 = scalar_lea.hbm %s4634_s7, 256  ;;  %p4170_p13 = scmp.lt.u32.totalorder %s4634_s7, %s5445_s0 }
  0xbb   : > { %p4165_p12 = scmp.ne.s32.totalorder %s4634_s7, %s4164_s13  ;;  %p4171_p0 = scmp.lt.u32.totalorder %s4169_s9, %s4164_s13 }
  0xbc   : > { %p4173_p5 = scmp.lt.u32.totalorder %s4164_s13, %s4634_s7 }
  0xbd   : > { %p4167_p1 = pnand %p4166_p8, %p4165_p12  ;;  %p4172_p2 = por %p4171_p0, %p4170_p13 }
  0xbf   : > { %p4168_p3 = pneg %p4167_p1  ;;  %p4174_p9 = por %p4173_p5, %p4172_p2 }
  0xc1   : > { %p4175_p4 = pnand %p4174_p9, %p4168_p3 }
  0xc3   : > { %4178 = shalt.err (!%p4175_p4)
}
  0xc4   : > { %s4179_s22 = scalar_lea.vmem %s4641_s18, 256  ;;  %s4347_s8 = smov [#allocation2]  }
  0xc5   : > { %p4180_p12 = scmp.ne.s32.totalorder %s4641_s18, %s4179_s22  ;;  %s4184_s24 = sshll.u32 %s4347_s8, 4  ;;  %s4185_s24 = int_to_ptr.vmem [resolvable:$false] %s4184_s24 }
  0xc6   : > { %s4186_s10 = scalar_lea.vmem %s4185_s24, 512  ;;  %p4187_p6 = scmp.lt.s32.totalorder %s4641_s18, %s4185_s24 }
  0xc7   : > { %p4182_p1 = pnand %p4180_p12, %p4166_p8  ;;  %p4188_p13 = scmp.lt.s32.totalorder %s4186_s10, %s4179_s22 }
  0xc9   : > { %p4183_p10 = pneg %p4182_p1  ;;  %p4189_p0 = por %p4188_p13, %p4187_p6 }
  0xcb   : > { %p4190_p2 = pnand %p4189_p0, %p4183_p10 }
  0xcd   : > { %4193 = shalt.err (!%p4190_p2)
}
  0xce   : > { %s5447_s9 = smov 4   ;;  %s5448_s11 = smov 64  }
  0xcf   : > { %3958 = dma.hbm_to_vmem [thread:$0]  (!%p4637_p11), %s4634_s7, 256, %s4641_s18, %s4648_s30, %s5448_s11, %s5448_s11, %s5447_s9  }
  0xd0   : > { %s475_s13 = scalar_lea.vmem [#allocation5], %s4628_s19  ;;  %s471_s3 = sand.u32 1, %s4338_s28  }
  0xd1   : > { %s482_s21 = sshll.u32 %s475_s13, 4  ;;  %s4683_s20 = scalar_lea.sflag [#allocation6], %s471_s3  ;;  %s4681_s21 = int_to_ptr.vmem [resolvable:$true] %s482_s21 }
  0xd2   : > { %s4194_s22 = scalar_lea.hbm %s4646_s17, 256  ;;  %s4199_s10 = scalar_lea.hbm %s5396_s1, 512 }
  0xd3   : > { %p4195_p6 = scmp.ne.s32.totalorder %s4646_s17, %s4194_s22  ;;  %p4200_p5 = scmp.lt.u32.totalorder %s4646_s17, %s5396_s1 }
  0xd4   : > { %p4201_p9 = scmp.lt.u32.totalorder %s4199_s10, %s4194_s22  ;;  %p4203_p12 = scmp.lt.u32.totalorder %s4194_s22, %s4646_s17 }
  0xd5   : > { %p4197_p10 = pnand %p4195_p6, %p4166_p8 }
  0xd6   : > { %p4202_p4 = por %p4201_p9, %p4200_p5 }
  0xd7   : > { %p4198_p3 = pneg %p4197_p10 }
  0xd8   : > { %p4204_p1 = por %p4203_p12, %p4202_p4 }
  0xda   : > { %p4205_p13 = pnand %p4204_p1, %p4198_p3 }
  0xdc   : > { %4208 = shalt.err (!%p4205_p13)
}
  0xdd   : > { %s4209_s19 = scalar_lea.vmem %s4681_s21, 256  ;;  %s4348_s7 = smov [#allocation5]  }
  0xde   : > { %p4210_p0 = scmp.ne.s32.totalorder %s4681_s21, %s4209_s19  ;;  %s4214_s18 = sshll.u32 %s4348_s7, 4  ;;  %s4215_s18 = int_to_ptr.vmem [resolvable:$false] %s4214_s18 }
  0xdf   : > { %s4216_s0 = scalar_lea.vmem %s4215_s18, 512  ;;  %p4217_p10 = scmp.lt.s32.totalorder %s4681_s21, %s4215_s18 }
  0xe0   : > { %p4212_p2 = pnand %p4210_p0, %p4166_p8  ;;  %p4218_p5 = scmp.lt.s32.totalorder %s4216_s0, %s4209_s19 }
  0xe2   : > { %p4213_p6 = pneg %p4212_p2  ;;  %p4219_p9 = por %p4218_p5, %p4217_p10 }
  0xe4   : > { %p4220_p4 = pnand %p4219_p9, %p4213_p6 }
  0xe6   : > { %4223 = shalt.err (!%p4220_p4)
}
  0xe7   : > { %3961 = dma.hbm_to_vmem [thread:$0]  (!%p4637_p11), %s4646_s17, 256, %s4681_s21, %s4683_s20, %s5448_s11, %s5448_s11, %s5447_s9  }
  0xe8   : > { %p5449_p8 = scmp.ne.s32.totalorder %s5432_s15, 0 }
  0xe9   : > { %s4715_s6 = sand.u32 (!%p5449_p8), 1, %s4330_s26  }
  0xea   : > { %494 = sbr.rel (%p5449_p8) target bundleno = 815 (0x32f), region = 68  ;;  %s4718_s30 = sshll.u32 (!%p5449_p8), %s4715_s6, 4 }
  0xeb   : > { %s497_s4 = scalar_lea.sflag (!%p5449_p8), [#allocation3], %s4715_s6  ;;  %s500_s13 = scalar_lea.vmem (!%p5449_p8), [#allocation2], %s4718_s30 }
  0xf1   : > { %4297 = dma.done.wait (%p4614_p7), %s497_s4, 256  }
  0xf2   : > { %4299 = vsyncadd (%p4614_p7), %s497_s4, 4294967040  ;;  %s505_s15 = sand.u32 1, %s4446_s14   ;;  %s509_s9 = scalar_lea.vmem [#allocation5], %s4718_s30 }
  0xf3   : > { %s506_s17 = scalar_lea.sflag [#allocation6], %s505_s15 }
  0xf4   : > { %4301 = dma.done.wait (%p4614_p7), %s506_s17, 256  }
  0xf5   : > { %4303 = vsyncadd (%p4614_p7), %s506_s17, 4294967040  ;;  %p5450_p11 = scmp.eq.s32.totalorder %s4446_s14, 0 }
  0xf7   : > { %4305 = dma.done.wait (%p5450_p11), [#allocation6], 1024   ;;  %p5451_p3 = pmov %p5450_p11 }
  0xf9   : > { %4307 = vsyncadd (%p5451_p3), [#allocation6], 4294966272  ;;  %p5452_p12 = pmov %p5451_p3 }
  0xfa   : > { %p5453_p1 = pmov %p5451_p3 }
  0xfb   : > { %4309 = dma.done.wait (%p5452_p12), [#allocation9], 1280  }
  0xfc   : > { %4311 = vsyncadd (%p5453_p1), [#allocation9], 4294966016  ;;  %p5454_p13 = pmov %p5453_p1 }
  0xfd   : > { %p5455_p0 = pmov %p5453_p1 }
  0xfe   : > { %4313 = dma.done.wait (%p5454_p13), [#allocation12], 2048  }
  0xff   : > { %4315 = vsyncadd (%p5455_p0), [#allocation12], 4294965248  ;;  %v4349_v0 = vmov 0.0   ;;  %vm4350_vm0 = vmmov 0   ;;  %vm775_vm1 = vcmask 1046528   ;;  %s5456_s10 = sld [smem:[#allocation26_spill]] }
 0x100   : > { %3735 = vmatprep.subr.mxu0 %v4349_v0  ;;  %3740 = vmatprep.subr.mxu1 %v4349_v0  ;;  %v4753_v1 = vld [vmem:[%s5400_s5] sm:$0x7f]  ;;  %v4758_v2 = vld [vmem:[%s5400_s5 + $0x8] sm:$0x7f]  ;;  %v3571_v18 = vld [vmem:[%s5397_s2 + $0x10] sm:$0xf] }
 0x101   : > { %3737 = vmatprep.mubr.msk.f32.mxu0 %vm4350_vm0, %v4349_v0  ;;  %3742 = vmatprep.mubr.msk.f32.mxu1 %vm4350_vm0, %v4349_v0  ;;  %v4760_v3 = vld [vmem:[%s500_s13] sm:$0xf]  ;;  %v4766_v4 = vld [vmem:[%s500_s13 + $0x4] sm:$0xf]  ;;  %v4768_v5 = vld [vmem:[%s500_s13 + $0x8] sm:$0xf] }
 0x102   : > { %3736 = vmatpush3.msk.msra.mxu0 %vm775_vm1, %v4753_v1  ;;  %3741 = vmatpush3.msk.msra.mxu1 %vm775_vm1, %v4758_v2  ;;  %v4770_v6 = vld [vmem:[%s500_s13 + $0xc] sm:$0xf]  ;;  %v4772_v7 = vld [vmem:[%s509_s9] sm:$0xf]  ;;  %v4774_v8 = vld [vmem:[%s509_s9 + $0x4] sm:$0xf] }
 0x103   : > { %v4776_v9 = vld [vmem:[%s509_s9 + $0x8] sm:$0xf]  ;;  %3745 = vmatprep.subr.mxu0 %v4349_v0  ;;  %3750 = vmatprep.subr.mxu1 %v4349_v0  ;;  %v4780_v10 = vld [vmem:[%s509_s9 + $0xc] sm:$0xf]  ;;  %v590_v11 = vld [vmem:[%s5397_s2] sm:$0xf]  ;;  %v4787_v12 = vadd.f32 %v4772_v7, %v4760_v3  ;;  %v4791_v14 = vadd.f32 %v4774_v8, %v4766_v4 }
 0x104   : > { %v599_v13 = vld [vmem:[#allocation7] sm:$0xf]  ;;  %v4795_v15 = vadd.f32 %v4776_v9, %v4768_v5  ;;  %v642_v19 = vld [vmem:[#allocation7 + $0x10] sm:$0xf]  ;;  %v4806_v20 = vadd.f32 %v4780_v10, %v4770_v6  ;;  %vm771_vm2 = vcmask 56320   ;;  %s5457_s21 = sld [smem:[#allocation28_spill]] }
 0x105   : > { %v603_v16 = vmul.f32 %v599_v13, %v4772_v7  ;;  %v615_v17 = vld [vmem:[%s5456_s10] sm:$0xf]  ;;  %v595_v21 = vmul.f32 %v4787_v12, %v590_v11  ;;  %v637_v23 = vmul.f32 %v3571_v18, %v4791_v14  ;;  %v646_v24 = vmul.f32 %v642_v19, %v4774_v8  ;;  %v3575_v25 = vld [vmem:[%s5456_s10 + $0x10] sm:$0xf]  ;;  %v591_v38 = vld [vmem:[%s5397_s2 + $0x4] sm:$0xf] }
 0x106   : > { %v619_v22 = vmul.f32 %v615_v17, %v4760_v3  ;;  %v3579_v26 = vld [vmem:[%s5397_s2 + $0x20] sm:$0xf]  ;;  %v663_v28 = vmul.f32 %v3575_v25, %v4766_v4  ;;  %v3587_v32 = vld [vmem:[%s5397_s2 + $0x30] sm:$0xf]  ;;  %v600_v39 = vld [vmem:[#allocation7 + $0x4] sm:$0xf]  ;;  %v596_v50 = vmul.f32 %v4787_v12, %v591_v38 }
 0x107   : > { %v686_v27 = vld [vmem:[#allocation7 + $0x20] sm:$0xf]  ;;  %v681_v29 = vmul.f32 %v3579_v26, %v4795_v15  ;;  %v730_v33 = vld [vmem:[#allocation7 + $0x30] sm:$0xf]  ;;  %v607_v34 = vsub.f32 %v595_v21, %v603_v16  ;;  %v650_v35 = vsub.f32 %v637_v23, %v646_v24  ;;  %v725_v42 = vmul.f32 %v3587_v32, %v4806_v20  ;;  %v616_v44 = vld [vmem:[%s5456_s10 + $0x4] sm:$0xf] }
 0x108   : > { %v690_v30 = vmul.f32 %v686_v27, %v4776_v9  ;;  %v3583_v31 = vld [vmem:[%s5456_s10 + $0x20] sm:$0xf]  ;;  %v3591_v37 = vld [vmem:[%s5456_s10 + $0x30] sm:$0xf]  ;;  %v4834_v40 = vadd.f32 %v619_v22, %v595_v21  ;;  %v734_v43 = vmul.f32 %v730_v33, %v4780_v10  ;;  %v3572_v45 = vld [vmem:[%s5397_s2 + $0x14] sm:$0xf]  ;;  %v4844_v48 = vadd.f32 %v663_v28, %v637_v23 }
 0x109   : > { %v707_v36 = vmul.f32 %v3583_v31, %v4768_v5  ;;  %v643_v46 = vld [vmem:[#allocation7 + $0x14] sm:$0xf]  ;;  %v654_v47 = vadd.f32 %v650_v35, %v607_v34  ;;  %v751_v49 = vmul.f32 %v3591_v37, %v4770_v6  ;;  %v3580_v52 = vld [vmem:[%s5397_s2 + $0x24] sm:$0xf]  ;;  %v604_v55 = vmul.f32 %v600_v39, %v4772_v7  ;;  %v592_v21 = vld [vmem:[%s5397_s2 + $0x8] sm:$0xf] }
 0x10a   : > { %v694_v41 = vsub.f32 %v681_v29, %v690_v30  ;;  %v3576_v51 = vld [vmem:[%s5456_s10 + $0x14] sm:$0xf]  ;;  %v687_v53 = vld [vmem:[#allocation7 + $0x24] sm:$0xf]  ;;  %v738_v54 = vsub.f32 %v725_v42, %v734_v43  ;;  %v620_v56 = vmul.f32 %v616_v44, %v4760_v3  ;;  %v638_v57 = vmul.f32 %v3572_v45, %v4791_v14  ;;  %v601_v22 = vld [vmem:[#allocation7 + $0x8] sm:$0xf] }
 0x10b   : > { %v3584_v58 = vld [vmem:[%s5456_s10 + $0x24] sm:$0xf]  ;;  %v4860_v60 = vadd.f32 %v707_v36, %v681_v29  ;;  %v647_v61 = vmul.f32 %v643_v46, %v4774_v8  ;;  %v664_v62 = vmul.f32 %v3576_v51, %v4766_v4  ;;  %v3588_v63 = vld [vmem:[%s5397_s2 + $0x34] sm:$0xf]  ;;  %v4867_v13 = vadd.f32 %v751_v49, %v725_v42  ;;  %v3573_v28 = vld [vmem:[%s5397_s2 + $0x18] sm:$0xf] }
 0x10c   : > { %v698_v59 = vadd.f32 %v694_v41, %v654_v47  ;;  %v731_v11 = vld [vmem:[#allocation7 + $0x34] sm:$0xf]  ;;  %v608_v16 = vsub.f32 %v596_v50, %v604_v55  ;;  %v682_v17 = vmul.f32 %v3580_v52, %v4795_v15  ;;  %v691_v18 = vmul.f32 %v687_v53, %v4776_v9  ;;  %v644_v33 = vld [vmem:[#allocation7 + $0x18] sm:$0xf]  ;;  %v3581_v34 = vld [vmem:[%s5397_s2 + $0x28] sm:$0xf] }
 0x10d   : > { %v3592_v19 = vld [vmem:[%s5456_s10 + $0x34] sm:$0xf]  ;;  %v4879_v24 = vadd.f32 %v620_v56, %v596_v50  ;;  %v651_v25 = vsub.f32 %v638_v57, %v647_v61  ;;  %v708_v26 = vmul.f32 %v3584_v58, %v4768_v5  ;;  %v668_v29 = vadd.f32 %v664_v62, %v638_v57  ;;  %v688_v35 = vld [vmem:[#allocation7 + $0x28] sm:$0xf]  ;;  %v3589_v41 = vld [vmem:[%s5397_s2 + $0x38] sm:$0xf] }
 0x10e   : > { %v4877_v23 = vadd.f32 %v738_v54, %v698_v59  ;;  %v4885_v27 = vld [vmem:[%s5400_s5 + $0x10] sm:$0x7f]  ;;  %v695_v30 = vsub.f32 %v682_v17, %v691_v18  ;;  %v4891_v31 = vmul.f32 %v3588_v63, %v4806_v20  ;;  %v735_v32 = vmul.f32 %v731_v11, %v4780_v10  ;;  %v732_v42 = vld [vmem:[#allocation7 + $0x38] sm:$0xf]  ;;  %v593_v43 = vld [vmem:[%s5397_s2 + $0xc] sm:$0xf] }
 0x10f   : > { %v655_v36 = vadd.f32 %v651_v25, %v608_v16  ;;  %v752_v37 = vmul.f32 %v3592_v19, %v4770_v6  ;;  %v4901_v38 = vmul.f32 %v4787_v12, %v592_v21  ;;  %v605_v39 = vmul.f32 %v601_v22, %v4772_v7  ;;  %v602_v47 = vld [vmem:[#allocation7 + $0xc] sm:$0xf]  ;;  %v3574_v49 = vld [vmem:[%s5397_s2 + $0x1c] sm:$0xf]  ;;  %s5458_s17 = sld [smem:[#allocation29_spill]]  ;;  %s3669_s8 = sshll.u32 %s4446_s14, 8 }
 0x110   : > { %3738 = vmatmul.mubr.msk.f32.vlgmr.msra.gmra.mrb[0].mxu0 %vm771_vm2, %v4877_v23  ;;  %v712_v44 = vadd.f32 %v708_v26, %v682_v17  ;;  %v739_v45 = vsub.f32 %v4891_v31, %v735_v32  ;;  %v639_v46 = vmul.f32 %v3573_v28, %v4791_v14  ;;  %v648_v52 = vmul.f32 %v644_v33, %v4774_v8  ;;  %v645_v54 = vld [vmem:[#allocation7 + $0x1c] sm:$0xf]  ;;  %v3582_v55 = vld [vmem:[%s5397_s2 + $0x2c] sm:$0xf]  ;;  %v617_v26 = vld [vmem:[%s5456_s10 + $0x8] sm:$0xf] }
 0x111   : > { %3746 = vmatpush3.msk.msra.mxu0 %vm775_vm1, %v4885_v27  ;;  %3747 = vmatprep.mubr.msk.f32.mxu0 %vm4350_vm0, %v4349_v0  ;;  %v699_v50 = vadd.f32 %v695_v30, %v655_v36  ;;  %v609_v51 = vsub.f32 %v4901_v38, %v605_v39  ;;  %v683_v53 = vmul.f32 %v3581_v34, %v4795_v15  ;;  %v689_v61 = vld [vmem:[#allocation7 + $0x2c] sm:$0xf]  ;;  %v3590_v62 = vld [vmem:[%s5397_s2 + $0x3c] sm:$0xf]  ;;  %v3577_v32 = vld [vmem:[%s5456_s10 + $0x18] sm:$0xf] }
 0x112   : > { %3755 = vmatprep.subr.mxu0 %v4349_v0  ;;  %v692_v56 = vmul.f32 %v688_v35, %v4776_v9  ;;  %v727_v57 = vmul.f32 %v3589_v41, %v4806_v20  ;;  %v736_v58 = vmul.f32 %v732_v42, %v4780_v10  ;;  %v598_v59 = vmul.f32 %v4787_v12, %v593_v43  ;;  %v4938_v11 = vld [vmem:[%s5400_s5 + $0x18] sm:$0x7f]  ;;  %v618_v42 = vld [vmem:[%s5456_s10 + $0xc] sm:$0xf]  ;;  %s5270_s24 = scalar_lea.vmem [#allocation14], %s4718_s30  ;;  %s5459_s0 = sld [smem:[#allocation34_spill]] }
 0x113   : > { %v4933_v63 = vadd.f32 %v739_v45, %v699_v50  ;;  %v652_v16 = vsub.f32 %v639_v46, %v648_v52  ;;  %v606_v17 = vmul.f32 %v602_v47, %v4772_v7  ;;  %v640_v18 = vmul.f32 %v3574_v49, %v4791_v14  ;;  %v733_v19 = vld [vmem:[#allocation7 + $0x3c] sm:$0xf]  ;;  %v3593_v39 = vld [vmem:[%s5456_s10 + $0x38] sm:$0xf]  ;;  %v4984_v45 = vld [vmem:[%s5457_s21] sm:$0x7f] }
 0x114   : > { %v696_v21 = vsub.f32 %v683_v53, %v692_v56  ;;  %v740_v12 = vsub.f32 %v727_v57, %v736_v58  ;;  %v649_v22 = vmul.f32 %v645_v54, %v4774_v8  ;;  %v684_v25 = vmul.f32 %v3582_v55, %v4795_v15  ;;  %v768_v56 = vld [vmem:[%s5457_s21 + $0x8] sm:$0x7f]  ;;  %s3356_s19 = sshll.u32 %s5270_s24, 4  ;;  %s5289_s13 = scalar_lea.vmem [#allocation15], %s4718_s30  ;;  %s5296_s19 = int_to_ptr.vmem [resolvable:$true] %s3356_s19 }
 0x115   : > { %3743 = vmatmul.mubr.msk.f32.vlgmr.msra.gmra.mrb[0].mxu1 %vm771_vm2, %v4933_v63  ;;  %v656_v28 = vadd.f32 %v652_v16, %v609_v51  ;;  %v610_v30 = vsub.f32 %v598_v59, %v606_v17  ;;  %v693_v7 = vmul.f32 %v689_v61, %v4776_v9  ;;  %v728_v14 = vmul.f32 %v3590_v62, %v4806_v20  ;;  %v3585_v9 = vld [vmem:[%s5456_s10 + $0x28] sm:$0xf]  ;;  %v769_v16 = vld [vmem:[%s5457_s21 + $0x10] sm:$0x7f]  ;;  %s3372_s15 = sshll.u32 %s5289_s13, 4  ;;  %s5460_s12 = sld [smem:[#allocation35_spill]]  ;;  %s5305_s15 = int_to_ptr.vmem [resolvable:$true] %s3372_s15 }
 0x116   : > { %3751 = vmatpush3.msk.msra.mxu1 %vm775_vm1, %v4938_v11  ;;  %3752 = vmatprep.mubr.msk.f32.mxu1 %vm4350_vm0, %v4349_v0  ;;  %v653_v8 = vsub.f32 %v640_v18, %v649_v22  ;;  %v737_v15 = vmul.f32 %v733_v19, %v4780_v10  ;;  %v671_v33 = vadd.f32 %v4844_v48, %v4834_v40  ;;  %vm1957_vm3 = vcmask 1043456   ;;  %s3338_s3 = scalar_lea.sflag [#allocation4], %s4715_s6  ;;  %s4224_s20 = scalar_lea.vmem %s5296_s19, 256 }
 0x117   : > { %v700_v20 = vadd.f32 %v696_v21, %v656_v28  ;;  %v697_v34 = vsub.f32 %v684_v25, %v693_v7  ;;  %3760 = vmatprep.subr.mxu1 %v4349_v0  ;;  %v672_v35 = vadd.f32 %v668_v29, %v4879_v24  ;;  %v621_v36 = vmul.f32 %v617_v26, %v4760_v3  ;;  %v3578_v24 = vld [vmem:[%s5456_s10 + $0x1c] sm:$0xf]  ;;  %p4225_p7 = scmp.ne.s32.totalorder %s5296_s19, %s4224_s20  ;;  %p5461_p2 = scmp.ne.s32.totalorder %s5443_s23, 0 }
 0x118   : > { %v657_v10 = vadd.f32 %v653_v8, %v610_v30  ;;  %v741_v41 = vsub.f32 %v728_v14, %v737_v15  ;;  %v715_v40 = vadd.f32 %v4860_v60, %v671_v33  ;;  %v665_v48 = vmul.f32 %v3577_v32, %v4766_v4  ;;  %v5114_v33 = vld [vmem:[%s5458_s17 + $0x4] sm:$0xf]  ;;  %s5286_s4 = scalar_lea.hbm %s5459_s0, %s3669_s8  ;;  %s4351_s14 = smov [#allocation14]  }
 0x119   : > { %v756_v29 = vadd.f32 %v752_v37, %v4891_v31  ;;  %v4979_v43 = vadd.f32 %v740_v12, %v700_v20  ;;  %v625_v60 = vadd.f32 %v621_v36, %v4901_v38  ;;  %v709_v47 = vmul.f32 %v3585_v9, %v4768_v5  ;;  %v3586_v31 = vld [vmem:[%s5456_s10 + $0x2c] sm:$0xf]  ;;  %v3594_v37 = vld [vmem:[%s5456_s10 + $0x3c] sm:$0xf]  ;;  %p4226_p6 = pnand %p4225_p7, %p5461_p2  ;;  %s4228_s22 = sshll.u32 %s4351_s14, 4  ;;  %s4229_s22 = int_to_ptr.vmem [resolvable:$false] %s4228_s22 }
 0x11a   : > { %v701_v49 = vadd.f32 %v697_v34, %v657_v10  ;;  %v716_v50 = vadd.f32 %v712_v44, %v672_v35  ;;  %v669_v51 = vadd.f32 %v665_v48, %v639_v46  ;;  %v753_v52 = vmul.f32 %v3593_v39, %v4770_v6  ;;  %v5125_v35 = vld [vmem:[%s5458_s17 + $0x8] sm:$0xf]  ;;  %p4231_p5 = scmp.lt.s32.totalorder %s5296_s19, %s4229_s22 }
 0x11b   : > { %3748 = vmatmul.mubr.msk.f32.vlgmr.msra.gmra.mrb[2].mxu0 %vm771_vm2, %v4979_v43  ;;  %v4998_v38 = vadd.f32 %v4867_v13, %v715_v40  ;;  %v713_v54 = vadd.f32 %v709_v47, %v683_v53  ;;  %v622_v44 = vmul.f32 %v618_v42, %v4760_v3  ;;  %v666_v46 = vmul.f32 %v3578_v24, %v4766_v4  ;;  %v1949_v40 = vld [vmem:[#allocation8] sm:$0xf]  ;;  %v1950_v24 = vld [vmem:[#allocation8 + $0x4] sm:$0xf]  ;;  %s5303_s11 = scalar_lea.hbm %s5460_s12, %s3669_s8  ;;  %p4227_p10 = pneg %p4226_p6 }
 0x11c   : > { %v5002_v55 = vadd.f32 %v741_v41, %v701_v49  ;;  %3756 = vmatpush3.msk.msra.mxu0 %vm775_vm1, %v4984_v45  ;;  %3757 = vmatprep.mubr.msk.f32.mxu0 %vm4350_vm0, %v4349_v0  ;;  %v673_v58 = vadd.f32 %v669_v51, %v625_v60  ;;  %v757_v13 = vadd.f32 %v753_v52, %v727_v57  ;;  %vm1953_vm4 = vcmask 31744   ;;  %v5136_v41 = vld [vmem:[%s5458_s17 + $0xc] sm:$0xf]  ;;  %v1951_v60 = vld [vmem:[#allocation8 + $0x8] sm:$0xf]  ;;  %s4230_s8 = scalar_lea.vmem %s4229_s22, 512 }
 0x11d   : > { %3765 = vmatprep.subr.mxu0 %v4349_v0  ;;  %v626_v53 = vadd.f32 %v622_v44, %v598_v59  ;;  %v670_v3 = vadd.f32 %v666_v46, %v640_v18  ;;  %v710_v4 = vmul.f32 %v3586_v31, %v4768_v5  ;;  %v754_v61 = vmul.f32 %v3594_v37, %v4770_v6  ;;  %v770_v6 = vld [vmem:[%s5457_s21 + $0x18] sm:$0x7f]  ;;  %p4232_p9 = scmp.lt.s32.totalorder %s4230_s8, %s4224_s20 }
 0x11e   : > { %3753 = vmatmul.mubr.msk.f32.vlgmr.msra.gmra.mrb[2].mxu1 %vm771_vm2, %v5002_v55  ;;  %v5016_v62 = vadd.f32 %v756_v29, %v716_v50  ;;  %v717_v17 = vadd.f32 %v713_v54, %v673_v58  ;;  %v1952_v50 = vld [vmem:[#allocation8 + $0xc] sm:$0xf]  ;;  %vm3316_vm5 = vcmask 52224  }
 0x11f   : > { %3761 = vmatpush3.msk.msra.mxu1 %vm775_vm1, %v768_v56  ;;  %3762 = vmatprep.mubr.msk.f32.mxu1 %vm4350_vm0, %v4349_v0  ;;  %v674_v57 = vadd.f32 %v670_v3, %v626_v53  ;;  %v714_v59 = vadd.f32 %v710_v4, %v684_v25  ;;  %v758_v5 = vadd.f32 %v754_v61, %v728_v14  ;;  %v5108_v14 = vld [vmem:[%s5458_s17] sm:$0xf]  ;;  %p4233_p4 = por %p4232_p9, %p4231_p5 }
 0x120   : > { %3758 = vmatmul.mubr.msk.f32.vlgmr.msra.gmra.mrb[4].mxu0 %vm771_vm2, %v4998_v38  ;;  %3770 = vmatprep.subr.mxu1 %v4349_v0  ;;  %v5030_v18 = vadd.f32 %v757_v13, %v717_v17 }
 0x121   : > { %3766 = vmatpush3.msk.msra.mxu0 %vm775_vm1, %v769_v16  ;;  %3767 = vmatprep.mubr.msk.f32.mxu0 %vm4350_vm0, %v4349_v0  ;;  %v718_v19 = vadd.f32 %v714_v59, %v674_v57  ;;  %p4234_p8 = pnand %p4233_p4, %p4227_p10 }
 0x122   : > { %3763 = vmatmul.mubr.msk.f32.vlgmr.msra.gmra.mrb[4].mxu1 %vm771_vm2, %v5016_v62  ;;  %3775 = vmatprep.subr.mxu0 %v4349_v0 }
 0x123   : > { %3771 = vmatpush3.msk.msra.mxu1 %vm775_vm1, %v770_v6  ;;  %3772 = vmatprep.mubr.msk.f32.mxu1 %vm4350_vm0, %v4349_v0  ;;  %v5041_v21 = vadd.f32 %v758_v5, %v718_v19 }
 0x124   : > { %3768 = vmatmul.mubr.msk.f32.vlgmr.msra.gmra.mrb[6].mxu0 %vm771_vm2, %v5030_v18  ;;  %3780 = vmatprep.subr.mxu1 %v4349_v0 }
 0x125   : > { %3776 = vmatpush3.msk.msra.mxu0 %vm775_vm1, %v4753_v1  ;;  %3777 = vmatprep.mubr.msk.f32.mxu0 %vm4350_vm0, %v4349_v0 }
 0x126   : > { %3773 = vmatmul.mubr.msk.f32.vlgmr.msra.gmra.mrb[6].mxu1 %vm771_vm2, %v5041_v21  ;;  %3785 = vmatprep.subr.mxu0 %v4349_v0 }
 0x127   : > { %3781 = vmatpush3.msk.msra.mxu1 %vm775_vm1, %v4758_v2  ;;  %3782 = vmatprep.mubr.msk.f32.mxu1 %vm4350_vm0, %v4349_v0 }
 0x128   : > { %3778 = vmatmul.mubr.msk.f32.vlgmr.msra.gmra.mrb[8].mxu0 %vm771_vm2, %v4998_v38  ;;  %3790 = vmatprep.subr.mxu1 %v4349_v0 }
 0x129   : > { %3786 = vmatpush3.msk.msra.mxu0 %vm775_vm1, %v4885_v27  ;;  %3787 = vmatprep.mubr.msk.f32.mxu0 %vm4350_vm0, %v4349_v0 }
 0x12a   : > { %3783 = vmatmul.mubr.msk.f32.vlgmr.msra.gmra.mrb[8].mxu1 %vm771_vm2, %v5016_v62  ;;  %3795 = vmatprep.subr.mxu0 %v4349_v0 }
 0x12b   : > { %3791 = vmatpush3.msk.msra.mxu1 %vm775_vm1, %v4938_v11  ;;  %3792 = vmatprep.mubr.msk.f32.mxu1 %vm4350_vm0, %v4349_v0 }
 0x12c   : > { %3788 = vmatmul.mubr.msk.f32.vlgmr.msra.gmra.mrb[10].mxu0 %vm771_vm2, %v5030_v18  ;;  %3800 = vmatprep.subr.mxu1 %v4349_v0 }
 0x12d   : > { %3796 = vmatpush3.msk.msra.mxu0 %vm775_vm1, %v4984_v45  ;;  %3797 = vmatprep.mubr.msk.f32.mxu0 %vm4350_vm0, %v4349_v0 }
 0x12e   : > { %3793 = vmatmul.mubr.msk.f32.vlgmr.msra.gmra.mrb[10].mxu1 %vm771_vm2, %v5041_v21  ;;  %3805 = vmatprep.subr.mxu0 %v4349_v0 }
 0x12f   : > { %3801 = vmatpush3.msk.msra.mxu1 %vm775_vm1, %v768_v56  ;;  %3802 = vmatprep.mubr.msk.f32.mxu1 %vm4350_vm0, %v4349_v0 }
 0x130   : > { %3798 = vmatmul.mubr.msk.f32.vlgmr.msra.gmra.mrb[8].mxu0 %vm771_vm2, %v4877_v23  ;;  %3810 = vmatprep.subr.mxu1 %v4349_v0 }
 0x131   : > { %3806 = vmatpush3.msk.msra.mxu0 %vm775_vm1, %v769_v16  ;;  %3807 = vmatprep.mubr.msk.f32.mxu0 %vm4350_vm0, %v4349_v0 }
 0x132   : > { %3803 = vmatmul.mubr.msk.f32.vlgmr.msra.gmra.mrb[8].mxu1 %vm771_vm2, %v4933_v63  ;;  %3815 = vmatprep.subr.mxu0 %v4349_v0 }
 0x133   : > { %3811 = vmatpush3.msk.msra.mxu1 %vm775_vm1, %v770_v6  ;;  %3812 = vmatprep.mubr.msk.f32.mxu1 %vm4350_vm0, %v4349_v0 }
 0x134   : > { %3808 = vmatmul.mubr.msk.f32.vlgmr.msra.gmra.mrb[10].mxu0 %vm771_vm2, %v4979_v43  ;;  %3820 = vmatprep.subr.mxu1 %v4349_v0 }
 0x135   : > { %3817 = vmatprep.mubr.msk.f32.mxu0 %vm4350_vm0, %v4349_v0 }
 0x136   : > { %3813 = vmatmul.mubr.msk.f32.vlgmr.msra.gmra.mrb[10].mxu1 %vm771_vm2, %v5002_v55 }
 0x137   : > { %3822 = vmatprep.mubr.msk.f32.mxu1 %vm4350_vm0, %v4349_v0 }
 0x1e3   : > { %v845_v1 = vpop.f32.mrb[0].mxu0 }
 0x1e4   : > { %v3739_v2 = vpop.f32.mrb[1].mxu0 }
 0x1e5   : > { %v3153_v2 = vld [vmem:[#allocation11 + $0x4] sm:$0xf] }
 0x1e8   : > { %v921_v27 = vpop.f32.mrb[0].mxu1 }
 0x1e9   : > { %v3744_v11 = vpop.f32.mrb[1].mxu1 }
 0x1ea   : > { %v3155_v11 = vld [vmem:[#allocation11 + $0xc] sm:$0xf] }
 0x1ee   : > { %v997_v12 = vpop.f32.mrb[2].mxu0 }
 0x1ef   : > { %v3749_v22 = vpop.f32.mrb[3].mxu0 }
 0x1f0   : > { %v3197_v22 = vld [vmem:[#allocation11 + $0x14] sm:$0xf] }
 0x1f1   : > { %v1073_v25 = vpop.f32.mrb[2].mxu1 }
 0x1f2   : > { %v3754_v26 = vpop.f32.mrb[3].mxu1 }
 0x1f3   : > { %v1149_v28 = vpop.f32.mrb[4].mxu0  ;;  %v3199_v26 = vld [vmem:[#allocation11 + $0x1c] sm:$0xf] }
 0x1f4   : > { %v1381_v30 = vsub.f32 %v845_v1, %v1149_v28  ;;  %v3759_v7 = vpop.f32.mrb[5].mxu0  ;;  %v3152_v1 = vld [vmem:[#allocation11] sm:$0xf] }
 0x1f5   : > { %v1225_v32 = vpop.f32.mrb[4].mxu1  ;;  %v3240_v28 = vld [vmem:[#allocation11 + $0x20] sm:$0xf]  ;;  %v3242_v7 = vld [vmem:[#allocation11 + $0x28] sm:$0xf] }
 0x1f6   : > { %v1382_v8 = vsub.f32 %v921_v27, %v1225_v32  ;;  %v3764_v15 = vpop.f32.mrb[5].mxu1  ;;  %3816 = vmatpush3.msk.msra.mxu0 %vm1957_vm3, %v1381_v30  ;;  %v3154_v27 = vld [vmem:[#allocation11 + $0x8] sm:$0xf]  ;;  %v3284_v32 = vld [vmem:[#allocation11 + $0x30] sm:$0xf] }
 0x1f7   : > { %v1301_v9 = vpop.f32.mrb[6].mxu0  ;;  %3825 = vmatprep.subr.mxu0 %v4349_v0  ;;  %3818 = vmatmul.mubr.msk.f32.vlgmr.msra.gmra.mrb[12].mxu0 %vm1953_vm4, %v5108_v14 }
 0x1f8   : > { %3821 = vmatpush3.msk.msra.mxu1 %vm1957_vm3, %v1382_v8  ;;  %v1383_v20 = vsub.f32 %v997_v12, %v1301_v9  ;;  %v3769_v34 = vpop.f32.mrb[7].mxu0  ;;  %3827 = vmatprep.mubr.msk.f32.mxu0 %vm4350_vm0, %v4349_v0  ;;  %v3196_v12 = vld [vmem:[#allocation11 + $0x10] sm:$0xf] }
 0x1f9   : > { %v1377_v36 = vpop.f32.mrb[6].mxu1  ;;  %3830 = vmatprep.subr.mxu1 %v4349_v0  ;;  %3823 = vmatmul.mubr.msk.f32.vlgmr.msra.gmra.mrb[12].mxu1 %vm1953_vm4, %v5114_v33  ;;  %v3286_v34 = vld [vmem:[#allocation11 + $0x38] sm:$0xf] }
 0x1fa   : > { %v1384_v39 = vsub.f32 %v1073_v25, %v1377_v36  ;;  %v3774_v10 = vpop.f32.mrb[7].mxu1  ;;  %3826 = vmatpush3.msk.msra.mxu0 %vm1957_vm3, %v1383_v20  ;;  %3832 = vmatprep.mubr.msk.f32.mxu1 %vm4350_vm0, %v4349_v0  ;;  %v3198_v25 = vld [vmem:[#allocation11 + $0x18] sm:$0xf] }
 0x1fb   : > { %3828 = vmatmul.mubr.msk.f32.vlgmr.msra.gmra.mrb[14].mxu0 %vm1953_vm4, %v5125_v35  ;;  %3835 = vmatprep.subr.mxu0 %v4349_v0 }
 0x1fc   : > { %3831 = vmatpush3.msk.msra.mxu1 %vm1957_vm3, %v1384_v39  ;;  %3837 = vmatprep.mubr.msk.f32.mxu0 %vm4350_vm0, %v4349_v0 }
 0x1fd   : > { %3833 = vmatmul.mubr.msk.f32.vlgmr.msra.gmra.mrb[14].mxu1 %vm1953_vm4, %v5136_v41  ;;  %3840 = vmatprep.subr.mxu1 %v4349_v0 }
 0x1fe   : > { %3842 = vmatprep.mubr.msk.f32.mxu1 %vm4350_vm0, %v4349_v0 }
 0x203   : > { %v1731_v48 = vpop.f32.mrb[8].mxu0 }
 0x204   : > { %v3799_v42 = vpop.f32.mrb[9].mxu0  ;;  %3836 = vmatpush3.msk.msra.mxu0 %vm1957_vm3, %v1731_v48 }
 0x205   : > { %v1801_v29 = vpop.f32.mrb[8].mxu1  ;;  %3838 = vmatmul.mubr.msk.f32.vlgmr.msra.gmra.mrb[16].mxu0 %vm1953_vm4, %v1949_v40  ;;  %3845 = vmatprep.subr.mxu0 %v4349_v0  ;;  %v3129_v42 = vld [vmem:[#allocation10 + $0x8] sm:$0xf] }
 0x206   : > { %v3804_v45 = vpop.f32.mrb[9].mxu1  ;;  %3841 = vmatpush3.msk.msra.mxu1 %vm1957_vm3, %v1801_v29  ;;  %3847 = vmatprep.mubr.msk.f32.mxu0 %vm4350_vm0, %v4349_v0 }
 0x207   : > { %3843 = vmatmul.mubr.msk.f32.vlgmr.msra.gmra.mrb[16].mxu1 %vm1953_vm4, %v1950_v24  ;;  %v1871_v47 = vpop.f32.mrb[10].mxu0  ;;  %3850 = vmatprep.subr.mxu1 %v4349_v0  ;;  %v3137_v45 = vld [vmem:[#allocation13 + $0x4] sm:$0xf] }
 0x208   : > { %v3809_v49 = vpop.f32.mrb[11].mxu0  ;;  %3846 = vmatpush3.msk.msra.mxu0 %vm1957_vm3, %v1871_v47  ;;  %3852 = vmatprep.mubr.msk.f32.mxu1 %vm4350_vm0, %v4349_v0 }
 0x209   : > { %v1941_v51 = vpop.f32.mrb[10].mxu1  ;;  %3848 = vmatmul.mubr.msk.f32.vlgmr.msra.gmra.mrb[18].mxu0 %vm1953_vm4, %v1951_v60  ;;  %3855 = vmatprep.subr.mxu0 %v4349_v0 }
 0x20a   : > { %v3814_v52 = vpop.f32.mrb[11].mxu1  ;;  %3851 = vmatpush3.msk.msra.mxu1 %vm1957_vm3, %v1941_v51  ;;  %3856 = vmatpush3.msk.msra.mxu0 %vm1957_vm3, %v1381_v30  ;;  %v3241_v30 = vld [vmem:[#allocation11 + $0x24] sm:$0xf] }
 0x20b   : > { %3853 = vmatmul.mubr.msk.f32.vlgmr.msra.gmra.mrb[18].mxu1 %vm1953_vm4, %v1952_v50  ;;  %3860 = vmatprep.subr.mxu1 %v4349_v0  ;;  %v3139_v52 = vld [vmem:[#allocation13 + $0xc] sm:$0xf] }
 0x20c   : > { %3861 = vmatpush3.msk.msra.mxu1 %vm1957_vm3, %v1382_v8  ;;  %3857 = vmatprep.mubr.msk.f32.mxu0 %vm4350_vm0, %v4349_v0 }
 0x20d   : > { %3862 = vmatprep.mubr.msk.f32.mxu1 %vm4350_vm0, %v4349_v0  ;;  %3865 = vmatprep.subr.mxu0 %v4349_v0 }
 0x20e   : > { %3870 = vmatprep.subr.mxu1 %v4349_v0  ;;  %3858 = vmatmul.mubr.msk.f32.vlgmr.msra.gmra.mrb[20].mxu0 %vm1953_vm4, %v1949_v40  ;;  %v3127_v40 = vld [vmem:[#allocation10] sm:$0xf] }
 0x20f   : > { %3863 = vmatmul.mubr.msk.f32.vlgmr.msra.gmra.mrb[20].mxu1 %vm1953_vm4, %v1950_v24  ;;  %3866 = vmatpush3.msk.msra.mxu0 %vm1957_vm3, %v1383_v20  ;;  %v3285_v20 = vld [vmem:[#allocation11 + $0x34] sm:$0xf]  ;;  %v3130_v24 = vld [vmem:[#allocation10 + $0xc] sm:$0xf] }
 0x210   : > { %3871 = vmatpush3.msk.msra.mxu1 %vm1957_vm3, %v1384_v39  ;;  %3867 = vmatprep.mubr.msk.f32.mxu0 %vm4350_vm0, %v4349_v0 }
 0x211   : > { %3872 = vmatprep.mubr.msk.f32.mxu1 %vm4350_vm0, %v4349_v0  ;;  %3875 = vmatprep.subr.mxu0 %v4349_v0 }
 0x212   : > { %3880 = vmatprep.subr.mxu1 %v4349_v0  ;;  %3868 = vmatmul.mubr.msk.f32.vlgmr.msra.gmra.mrb[22].mxu0 %vm1953_vm4, %v1951_v60  ;;  %v3138_v60 = vld [vmem:[#allocation13 + $0x8] sm:$0xf] }
 0x213   : > { %3873 = vmatmul.mubr.msk.f32.vlgmr.msra.gmra.mrb[22].mxu1 %vm1953_vm4, %v1952_v50  ;;  %3876 = vmatpush3.msk.msra.mxu0 %vm1957_vm3, %v1731_v48  ;;  %v3128_v48 = vld [vmem:[#allocation10 + $0x4] sm:$0xf] }
 0x214   : > { %3881 = vmatpush3.msk.msra.mxu1 %vm1957_vm3, %v1801_v29  ;;  %3877 = vmatprep.mubr.msk.f32.mxu0 %vm4350_vm0, %v4349_v0  ;;  %v3136_v29 = vld [vmem:[#allocation13] sm:$0xf] }
 0x215   : > { %3882 = vmatprep.mubr.msk.f32.mxu1 %vm4350_vm0, %v4349_v0  ;;  %3885 = vmatprep.subr.mxu0 %v4349_v0 }
 0x216   : > { %3890 = vmatprep.subr.mxu1 %v4349_v0  ;;  %3878 = vmatmul.mubr.msk.f32.vlgmr.msra.gmra.mrb[20].mxu0 %vm1953_vm4, %v5108_v14  ;;  %v3243_v14 = vld [vmem:[#allocation11 + $0x2c] sm:$0xf] }
 0x217   : > { %3883 = vmatmul.mubr.msk.f32.vlgmr.msra.gmra.mrb[20].mxu1 %vm1953_vm4, %v5114_v33  ;;  %3886 = vmatpush3.msk.msra.mxu0 %vm1957_vm3, %v1871_v47 }
 0x218   : > { %3891 = vmatpush3.msk.msra.mxu1 %vm1957_vm3, %v1941_v51  ;;  %3887 = vmatprep.mubr.msk.f32.mxu0 %vm4350_vm0, %v4349_v0 }
 0x219   : > { %3892 = vmatprep.mubr.msk.f32.mxu1 %vm4350_vm0, %v4349_v0 }
 0x21a   : > { %3888 = vmatmul.mubr.msk.f32.vlgmr.msra.gmra.mrb[22].mxu0 %vm1953_vm4, %v5125_v35  ;;  %v3287_v35 = vld [vmem:[#allocation11 + $0x3c] sm:$0xf] }
 0x21b   : > { %3893 = vmatmul.mubr.msk.f32.vlgmr.msra.gmra.mrb[22].mxu1 %vm1953_vm4, %v5136_v41 }
 0x2ca   : > { %v2027_v31 = vpop.f32.mrb[12].mxu0 }
 0x2cb   : > { %v3819_v37 = vpop.f32.mrb[13].mxu0 }
 0x2cc   : > { %v2103_v54 = vpop.f32.mrb[12].mxu1  ;;  %v3180_v37 = vld [vmem:[#allocation13 + $0x14] sm:$0xf] }
 0x2cd   : > { %v3824_v44 = vpop.f32.mrb[13].mxu1 }
 0x2ce   : > { %v2179_v46 = vpop.f32.mrb[14].mxu0 }
 0x2cf   : > { %v3829_v56 = vpop.f32.mrb[15].mxu0 }
 0x2d0   : > { %v2255_v58 = vpop.f32.mrb[14].mxu1 }
 0x2d1   : > { %v3834_v13 = vpop.f32.mrb[15].mxu1 }
 0x2d2   : > { %v3169_v13 = vld [vmem:[#allocation10 + $0x10] sm:$0xf] }
 0x2d8   : > { %v2331_v53 = vpop.f32.mrb[16].mxu0 }
 0x2d9   : > { %v2563_v3 = vsub.f32 %v2027_v31, %v2331_v53  ;;  %v3839_v4 = vpop.f32.mrb[17].mxu0  ;;  %v3179_v31 = vld [vmem:[#allocation13 + $0x10] sm:$0xf]  ;;  %v3170_v53 = vld [vmem:[#allocation10 + $0x14] sm:$0xf] }
 0x2da   : > { %v2407_v61 = vpop.f32.mrb[16].mxu1 }
 0x2db   : > { %v3844_v16 = vpop.f32.mrb[17].mxu1  ;;  %v2564_v0 = vsub.f32 %v2103_v54, %v2407_v61  ;;  %v3156_v8 = vmul.f32 %v3152_v1, %v2563_v3  ;;  %v3157_v15 = vmul.f32 %v3153_v2, %v2563_v3  ;;  %v3158_v33 = vmul.f32 %v3154_v27, %v2563_v3 }
 0x2dc   : > { %v2483_v17 = vpop.f32.mrb[18].mxu0  ;;  %v3159_v9 = vmul.f32 %v3155_v11, %v2563_v3 }
 0x2dd   : > { %v5207_v57 = vsub.f32 %v2179_v46, %v2483_v17  ;;  %v3849_v59 = vpop.f32.mrb[19].mxu0  ;;  %v5211_v36 = vmul.f32 %v3196_v12, %v2564_v0  ;;  %v5213_v39 = vmul.f32 %v3197_v22, %v2564_v0  ;;  %v5215_v10 = vmul.f32 %v3198_v25, %v2564_v0 }
 0x2de   : > { %v2559_v5 = vpop.f32.mrb[18].mxu1  ;;  %v5217_v41 = vmul.f32 %v3199_v26, %v2564_v0 }
 0x2df   : > { %v3854_v6 = vpop.f32.mrb[19].mxu1  ;;  %v5209_v19 = vsub.f32 %v2255_v58, %v2559_v5  ;;  %v5220_v47 = vmul.f32 %v3240_v28, %v5207_v57  ;;  %v5223_v49 = vmul.f32 %v3241_v30, %v5207_v57  ;;  %v5226_v50 = vmul.f32 %v3242_v7, %v5207_v57  ;;  %v3171_v5 = vld [vmem:[#allocation10 + $0x18] sm:$0xf] }
 0x2e0   : > { %v5229_v51 = vmul.f32 %v3243_v14, %v5207_v57  ;;  %v3172_v6 = vld [vmem:[#allocation10 + $0x1c] sm:$0xf] }
 0x2e1   : > { %v5232_v54 = vmul.f32 %v3284_v32, %v5209_v19  ;;  %v5235_v44 = vmul.f32 %v3285_v20, %v5209_v19  ;;  %v5238_v46 = vmul.f32 %v3286_v34, %v5209_v19  ;;  %v5241_v56 = vmul.f32 %v3287_v35, %v5209_v19  ;;  %v3181_v20 = vld [vmem:[#allocation13 + $0x18] sm:$0xf]  ;;  %v3182_v34 = vld [vmem:[#allocation13 + $0x1c] sm:$0xf] }
 0x2e9   : > { %v2913_v58 = vpop.f32.mrb[20].mxu0 }
 0x2ea   : > { %v3131_v4 = vadd.f32 %v2913_v58, %v2563_v3  ;;  %v3140_v61 = vmul.f32 %v3136_v29, %v2913_v58  ;;  %v3141_v16 = vmul.f32 %v3137_v45, %v2913_v58  ;;  %v3142_v17 = vmul.f32 %v3138_v60, %v2913_v58  ;;  %v2983_v59 = vpop.f32.mrb[20].mxu1  ;;  %v3879_v1 = vpop.f32.mrb[21].mxu0 }
 0x2eb   : > { %v3143_v2 = vmul.f32 %v3139_v52, %v2913_v58  ;;  %v3173_v27 = vadd.f32 %v2983_v59, %v2564_v0  ;;  %v3183_v11 = vmul.f32 %v3179_v31, %v2983_v59  ;;  %v3184_v12 = vmul.f32 %v3180_v37, %v2983_v59  ;;  %v3884_v22 = vpop.f32.mrb[21].mxu1 }
 0x2ec   : > { %v3132_v25 = vmul.f32 %v3131_v4, %v3127_v40  ;;  %v3133_v26 = vmul.f32 %v3131_v4, %v3128_v48  ;;  %v3134_v28 = vmul.f32 %v3131_v4, %v3129_v42  ;;  %v3135_v30 = vmul.f32 %v3131_v4, %v3130_v24  ;;  %v3214_v22 = vld [vmem:[#allocation10 + $0x24] sm:$0xf] }
 0x2ed   : > { %v3174_v7 = vmul.f32 %v3173_v27, %v3169_v13  ;;  %v3175_v14 = vmul.f32 %v3173_v27, %v3170_v53  ;;  %v3176_v32 = vmul.f32 %v3173_v27, %v3171_v5  ;;  %v3177_v3 = vmul.f32 %v3173_v27, %v3172_v6  ;;  %v3053_v35 = vpop.f32.mrb[22].mxu0  ;;  %v3224_v6 = vld [vmem:[#allocation13 + $0x24] sm:$0xf]  ;;  %v3213_v27 = vld [vmem:[#allocation10 + $0x20] sm:$0xf] }
 0x2ee   : > { %v3144_v29 = vsub.f32 %v3132_v25, %v3140_v61  ;;  %v3145_v45 = vsub.f32 %v3133_v26, %v3141_v16  ;;  %v3146_v60 = vsub.f32 %v3134_v28, %v3142_v17  ;;  %v3147_v1 = vsub.f32 %v3135_v30, %v3143_v2  ;;  %v5243_v52 = vpop.f32.mrb[22].mxu1  ;;  %v3889_v0 = vpop.f32.mrb[23].mxu0  ;;  %v3223_v17 = vld [vmem:[#allocation13 + $0x20] sm:$0xf]  ;;  %v3225_v2 = vld [vmem:[#allocation13 + $0x28] sm:$0xf] }
 0x2ef   : > { %v3160_v31 = vadd.f32 %v3156_v8, %v3132_v25  ;;  %v3161_v37 = vadd.f32 %v3157_v15, %v3133_v26  ;;  %v3162_v40 = vadd.f32 %v3158_v33, %v3134_v28  ;;  %v3163_v48 = vadd.f32 %v3159_v9, %v3135_v30  ;;  %v3894_v42 = vpop.f32.mrb[23].mxu1  ;;  %v3215_v26 = vld [vmem:[#allocation10 + $0x28] sm:$0xf]  ;;  %v3257_v28 = vld [vmem:[#allocation10 + $0x30] sm:$0xf] }
 0x2f0   : > { %v3185_v24 = vmul.f32 %v3181_v20, %v2983_v59  ;;  %v3186_v58 = vmul.f32 %v3182_v34, %v2983_v59  ;;  %v3187_v13 = vsub.f32 %v3174_v7, %v3183_v11  ;;  %v3188_v53 = vsub.f32 %v3175_v14, %v3184_v12  ;;  %v3226_v59 = vld [vmem:[#allocation13 + $0x2c] sm:$0xf] }
 0x2f1   : > { %v3204_v4 = vadd.f32 %v5211_v36, %v3174_v7  ;;  %v3205_v5 = vadd.f32 %v5213_v39, %v3175_v14  ;;  %v3206_v61 = vadd.f32 %v5215_v10, %v3176_v32  ;;  %v3207_v16 = vadd.f32 %v5217_v41, %v3177_v3  ;;  %v3216_v39 = vld [vmem:[#allocation10 + $0x2c] sm:$0xf]  ;;  %v3258_v14 = vld [vmem:[#allocation10 + $0x34] sm:$0xf] }
 0x2f2   : > { %v3189_v8 = vsub.f32 %v3176_v32, %v3185_v24  ;;  %v3190_v15 = vsub.f32 %v3177_v3, %v3186_v58  ;;  %v3191_v33 = vadd.f32 %v3187_v13, %v3144_v29  ;;  %v3192_v9 = vadd.f32 %v3188_v53, %v3145_v45  ;;  %v3259_v32 = vld [vmem:[#allocation10 + $0x38] sm:$0xf]  ;;  %v3260_v3 = vld [vmem:[#allocation10 + $0x3c] sm:$0xf]  ;;  %v3267_v53 = vld [vmem:[#allocation13 + $0x30] sm:$0xf] }
 0x2f3   : > { %v3208_v11 = vadd.f32 %v3204_v4, %v3160_v31  ;;  %v3209_v12 = vadd.f32 %v3205_v5, %v3161_v37  ;;  %v3210_v25 = vadd.f32 %v3206_v61, %v3162_v40  ;;  %v3211_v36 = vadd.f32 %v3207_v16, %v3163_v48  ;;  %v3268_v61 = vld [vmem:[#allocation13 + $0x34] sm:$0xf]  ;;  %v3269_v16 = vld [vmem:[#allocation13 + $0x38] sm:$0xf] }
 0x2f4   : > { %v3193_v10 = vadd.f32 %v3189_v8, %v3146_v60  ;;  %v3194_v30 = vadd.f32 %v3190_v15, %v3147_v1  ;;  %v3217_v41 = vadd.f32 %v3053_v35, %v5207_v57  ;;  %v3227_v7 = vmul.f32 %v3223_v17, %v3053_v35  ;;  %v3270_v17 = vld [vmem:[#allocation13 + $0x3c] sm:$0xf] }
 0x2f5   : > { %v3228_v20 = vmul.f32 %v3224_v6, %v3053_v35  ;;  %v3229_v34 = vmul.f32 %v3225_v2, %v3053_v35  ;;  %v3230_v29 = vmul.f32 %v3226_v59, %v3053_v35  ;;  %v3261_v45 = vadd.f32 %v5243_v52, %v5209_v19 }
 0x2f6   : > { %v3218_v0 = vmul.f32 %v3217_v41, %v3213_v27  ;;  %v3219_v31 = vmul.f32 %v3217_v41, %v3214_v22  ;;  %v3220_v37 = vmul.f32 %v3217_v41, %v3215_v26  ;;  %v3221_v40 = vmul.f32 %v3217_v41, %v3216_v39 }
 0x2f7   : > { %v3262_v48 = vmul.f32 %v3261_v45, %v3257_v28  ;;  %v3263_v42 = vmul.f32 %v3261_v45, %v3258_v14  ;;  %v3264_v60 = vmul.f32 %v3261_v45, %v3259_v32  ;;  %v3265_v1 = vmul.f32 %v3261_v45, %v3260_v3 }
 0x2f8   : > { %v3231_v24 = vsub.f32 %v3218_v0, %v3227_v7  ;;  %v3232_v57 = vsub.f32 %v3219_v31, %v3228_v20  ;;  %v3233_v58 = vsub.f32 %v3220_v37, %v3229_v34  ;;  %v3234_v13 = vsub.f32 %v3221_v40, %v3230_v29 }
 0x2f9   : > { %v3248_v4 = vadd.f32 %v5220_v47, %v3218_v0  ;;  %v3249_v35 = vadd.f32 %v5223_v49, %v3219_v31  ;;  %v3250_v5 = vadd.f32 %v5226_v50, %v3220_v37  ;;  %v3251_v19 = vadd.f32 %v5229_v51, %v3221_v40 }
 0x2fa   : > { %v3235_v6 = vadd.f32 %v3231_v24, %v3191_v33  ;;  %v3236_v2 = vadd.f32 %v3232_v57, %v3192_v9  ;;  %v3237_v8 = vadd.f32 %v3233_v58, %v3193_v10  ;;  %v3238_v15 = vadd.f32 %v3234_v13, %v3194_v30 }
 0x2fb   : > { %v3252_v27 = vadd.f32 %v3248_v4, %v3208_v11  ;;  %v3253_v22 = vadd.f32 %v3249_v35, %v3209_v12  ;;  %v3254_v59 = vadd.f32 %v3250_v5, %v3210_v25  ;;  %v3255_v26 = vadd.f32 %v3251_v19, %v3211_v36 }
 0x2fc   : > { %v3271_v39 = vmul.f32 %v3267_v53, %v5243_v52  ;;  %v3272_v47 = vmul.f32 %v3268_v61, %v5243_v52  ;;  %v3273_v49 = vmul.f32 %v3269_v16, %v5243_v52  ;;  %v3274_v50 = vmul.f32 %v3270_v17, %v5243_v52 }
 0x2fd   : > { %v3292_v51 = vadd.f32 %v5232_v54, %v3262_v48  ;;  %v3293_v28 = vadd.f32 %v5235_v44, %v3263_v42  ;;  %v3294_v33 = vadd.f32 %v5238_v46, %v3264_v60  ;;  %v3295_v9 = vadd.f32 %v5241_v56, %v3265_v1 }
 0x2fe   : > { %v3275_v11 = vsub.f32 %v3262_v48, %v3271_v39  ;;  %v3276_v12 = vsub.f32 %v3263_v42, %v3272_v47  ;;  %v3277_v25 = vsub.f32 %v3264_v60, %v3273_v49  ;;  %v3278_v36 = vsub.f32 %v3265_v1, %v3274_v50 }
 0x2ff   : > { %v3296_v10 = vadd.f32 %v3292_v51, %v3252_v27  ;;  %v3297_v30 = vadd.f32 %v3293_v28, %v3253_v22  ;;  %v3298_v41 = vadd.f32 %v3294_v33, %v3254_v59  ;;  %v3299_v7 = vadd.f32 %v3295_v9, %v3255_v26 }
 0x300   : > { %v3279_v52 = vadd.f32 %v3275_v11, %v3235_v6  ;;  %v3280_v14 = vadd.f32 %v3276_v12, %v3236_v2  ;;  %v3281_v54 = vadd.f32 %v3277_v25, %v3237_v8  ;;  %v3282_v32 = vadd.f32 %v3278_v36, %v3238_v15 }
 0x301   : > { %v3308_v44 = vmul.f32 %v3296_v10, %v4998_v38  ;;  %v3309_v46 = vmul.f32 %v3297_v30, %v5016_v62  ;;  %v3310_v56 = vmul.f32 %v3298_v41, %v5030_v18  ;;  %v3311_v3 = vmul.f32 %v3299_v7, %v5041_v21 }
 0x302   : > { %v3300_v20 = vadd.f32 1.0, %v3279_v52  ;;  %v3301_v34 = vadd.f32 1.0, %v3280_v14  ;;  %v3302_v29 = vadd.f32 1.0, %v3281_v54  ;;  %v3303_v45 = vadd.f32 1.0, %v3282_v32 }
 0x303   : > { %v3321_v0 = vmul.f32 %v3296_v10, %v4877_v23  ;;  %v3322_v31 = vmul.f32 %v3297_v30, %v4933_v63  ;;  %v3323_v37 = vmul.f32 %v3298_v41, %v4979_v43  ;;  %v3324_v40 = vmul.f32 %v3299_v7, %v5002_v55 }
 0x304   : > { %v3304_v48 = vmul.f32 %v3300_v20, %v4877_v23  ;;  %v3305_v42 = vmul.f32 %v3301_v34, %v4933_v63  ;;  %v3306_v60 = vmul.f32 %v3302_v29, %v4979_v43  ;;  %v3307_v1 = vmul.f32 %v3303_v45, %v5002_v55 }
 0x305   : > { %v3325_v23 = vmul.f32 %v3300_v20, %v4998_v38  ;;  %v3326_v63 = vmul.f32 %v3301_v34, %v5016_v62  ;;  %v3327_v43 = vmul.f32 %v3302_v29, %v5030_v18  ;;  %v3328_v55 = vmul.f32 %v3303_v45, %v5041_v21 }
 0x306   : > { %v3312_v24 = vsub.f32 %v3304_v48, %v3308_v44  ;;  %v3313_v57 = vsub.f32 %v3305_v42, %v3309_v46  ;;  %v3314_v58 = vsub.f32 %v3306_v60, %v3310_v56  ;;  %v3315_v13 = vsub.f32 %v3307_v1, %v3311_v3 }
 0x307   : > { %v3329_v38 = vadd.f32 %v3325_v23, %v3321_v0  ;;  %v3330_v53 = vadd.f32 %v3326_v63, %v3322_v31  ;;  %v3331_v4 = vadd.f32 %v3327_v43, %v3323_v37  ;;  %v3332_v62 = vadd.f32 %v3328_v55, %v3324_v40 }
 0x308   : > { %3317 = vst.msk [vmem:[%s5270_s24] sm:$0xf] %vm3316_vm5, %v3312_v24  ;;  %3318 = vst.msk [vmem:[%s5270_s24 + $0x4] sm:$0xf] %vm3316_vm5, %v3313_v57 }
 0x309   : > { %3319 = vst.msk [vmem:[%s5270_s24 + $0x8] sm:$0xf] %vm3316_vm5, %v3314_v58  ;;  %3320 = vst.msk [vmem:[%s5270_s24 + $0xc] sm:$0xf] %vm3316_vm5, %v3315_v13 }
 0x30a   : > { %4237 = shalt.err (!%p4234_p8)
}
 0x30b   : > { %s4238_s24 = scalar_lea.hbm %s5286_s4, 256  ;;  %s4242_s30 = scalar_lea.hbm %s5459_s0, 512 }
 0x30c   : > { %p4239_p11 = scmp.ne.s32.totalorder %s5286_s4, %s4238_s24  ;;  %p4243_p1 = scmp.lt.u32.totalorder %s5286_s4, %s5459_s0 }
 0x30d   : > { %p4244_p13 = scmp.lt.u32.totalorder %s4242_s30, %s4238_s24  ;;  %p4246_p7 = scmp.lt.u32.totalorder %s4238_s24, %s5286_s4 }
 0x30e   : > { %p4240_p3 = pnand %p4239_p11, %p5461_p2 }
 0x30f   : > { %p4245_p0 = por %p4244_p13, %p4243_p1 }
 0x310   : > { %p4241_p12 = pneg %p4240_p3 }
 0x311   : > { %p4247_p6 = por %p4246_p7, %p4245_p0 }
 0x313   : > { %p4248_p10 = pnand %p4247_p6, %p4241_p12 }
 0x315   : > { %4251 = shalt.err (!%p4248_p10)
}
 0x316   : > { %s4352_s20 = smov 64   ;;  %s4353_s22 = smov 4   ;;  %3333 = vst.msk [vmem:[%s5289_s13] sm:$0xf] %vm3316_vm5, %v3329_v38  ;;  %3334 = vst.msk [vmem:[%s5289_s13 + $0x4] sm:$0xf] %vm3316_vm5, %v3330_v53 }
 0x317   : > { %3935 = dma.vmem_to_hbm [thread:$0]  (%p5461_p2), %s5296_s19, 256, %s5286_s4, %s3338_s3, %s4352_s20, %s4352_s20, %s4353_s22  }
 0x318   : > { %3335 = vst.msk [vmem:[%s5289_s13 + $0x8] sm:$0xf] %vm3316_vm5, %v3331_v4  ;;  %3336 = vst.msk [vmem:[%s5289_s13 + $0xc] sm:$0xf] %vm3316_vm5, %v3332_v62  ;;  %s3343_s8 = scalar_lea.sflag [#allocation16], %s4715_s6  ;;  %s4252_s24 = scalar_lea.vmem %s5305_s15, 256 }
 0x319   : > { %p4253_p5 = scmp.ne.s32.totalorder %s5305_s15, %s4252_s24  ;;  %s4354_s7 = smov [#allocation15]  }
 0x31a   : > { %s4256_s18 = sshll.u32 %s4354_s7, 4  ;;  %s4257_s18 = int_to_ptr.vmem [resolvable:$false] %s4256_s18 }
 0x31b   : > { %p4254_p9 = pnand %p4253_p5, %p5461_p2  ;;  %s4258_s30 = scalar_lea.vmem %s4257_s18, 512 }
 0x31c   : > { %p4259_p8 = scmp.lt.s32.totalorder %s5305_s15, %s4257_s18  ;;  %p4260_p11 = scmp.lt.s32.totalorder %s4258_s30, %s4252_s24 }
 0x31d   : > { %p4255_p4 = pneg %p4254_p9 }
 0x31e   : > { %p4261_p3 = por %p4260_p11, %p4259_p8 }
 0x320   : > { %p4262_p12 = pnand %p4261_p3, %p4255_p4 }
 0x322   : > { %4265 = shalt.err (!%p4262_p12)
}
 0x323   : > { %s4266_s19 = scalar_lea.hbm %s5303_s11, 256  ;;  %s4270_s3 = scalar_lea.hbm %s5460_s12, 512 }
 0x324   : > { %p4267_p1 = scmp.ne.s32.totalorder %s5303_s11, %s4266_s19  ;;  %p4271_p7 = scmp.lt.u32.totalorder %s5303_s11, %s5460_s12 }
 0x325   : > { %p4272_p6 = scmp.lt.u32.totalorder %s4270_s3, %s4266_s19  ;;  %p4274_p5 = scmp.lt.u32.totalorder %s4266_s19, %s5303_s11 }
 0x326   : > { %p4268_p13 = pnand %p4267_p1, %p5461_p2 }
 0x327   : > { %p4273_p10 = por %p4272_p6, %p4271_p7 }
 0x328   : > { %p4269_p0 = pneg %p4268_p13 }
 0x329   : > { %p4275_p9 = por %p4274_p5, %p4273_p10 }
 0x32b   : > { %p4276_p4 = pnand %p4275_p9, %p4269_p0 }
 0x32d   : > { %4279 = shalt.err (!%p4276_p4)
}
 0x32e   : > { %3936 = dma.vmem_to_hbm [thread:$0]  (%p5461_p2), %s5305_s15, 256, %s5303_s11, %s3343_s8, %s4352_s20, %s4352_s20, %s4353_s22  }
 0x32f PF: > { %s3387_s24 = sand.u32 1, %s4326_s25   ;;  %p5462_p8 = scmp.ne.s32.totalorder %s5444_s29, 0 }
 0x330   : > { %p5463_p11 = scmp.ge.s32.totalorder %s4338_s28, 2  ;;  %s3388_s7 = scalar_lea.sflag [#allocation4], %s3387_s24 }
 0x332   : > { %p3963_p3 = pnand %p5463_p11, %p5462_p8 }
 0x334   : > { %4317 = dma.done.wait (!%p3963_p3), %s3388_s7, 256  }
 0x335   : > { %4319 = vsyncadd (!%p3963_p3), %s3388_s7, 4294967040  ;;  %s3397_s23 = scalar_lea.sflag [#allocation16], %s3387_s24 }
 0x336   : > { %4321 = dma.done.wait (!%p3963_p3), %s3397_s23, 256  }
 0x337   : > { %4323 = vsyncadd (!%p3963_p3), %s3397_s23, 4294967040  ;;  %s5464_s6 = sld [smem:[#allocation24_spill]]  ;;  %p35_p2 = scmp.ge.s32.totalorder %s4598_s16, 4  }
 0x338   : > { %s5465_s25 = smov %s4330_s26  ;;  %s5466_s26 = smov %s4334_s27 }
 0x339   : > { %s5468_s28 = smov %s4598_s16  ;;  %37 = sbr.rel (!%p35_p2) target bundleno = 23 (0x17), region = 181 }
 0x33d   : > { %s5467_s27 = smov %s5464_s6 }
 0x340   :  { %3402 = vsyncpa [#allocation3], 1 }
 0x341   :  { %3404 = vsyncpa [#allocation3 + $0x1], 1 }
 0x342   :  { %3405 = vsyncpa [#allocation6], 1 }
 0x343   :  { %3407 = vsyncpa [#allocation6 + $0x1], 1 }
 0x344   :  { %3408 = vsyncpa [#allocation9], 1 }
 0x345   :  { %3409 = vsyncpa [#allocation12], 1 }
 0x346   :  { %3410 = vsyncpa [#allocation4], 1 }
 0x347   :  { %3412 = vsyncpa [#allocation4 + $0x1], 1 }
 0x348   :  { %3413 = vsyncpa [#allocation16], 1 }
 0x349   :  { %3415 = vsyncpa [#allocation16 + $0x1], 1 }

</bundles_post_ra>
